<compile_context>
chip_gen: v7x
topology: tpu7x:2x2x1
jax: 0.10.0
libtpu: 0.0.40
codegen_flags: <defaults>
</compile_context>

<pallas_src>
import jax
import jax.numpy as jnp
from jax.experimental import pallas as pl
from jax.experimental.pallas import tpu as pltpu

_LANE = 128


def _vq_kernel(z_ref, e_ref, esq_ref, zq_ref, err_ref):
    # z_ref   : (tn, Cp)    input rows, channel-padded to a lane multiple
    # e_ref   : (K,  Cp)    codebook, channel-padded
    # esq_ref : (1,  K)     precomputed ||e_k||^2 (f32, hoisted to wrapper)
    # zq_ref  : (tn, Cp)    quantized rows
    # err_ref : (1, 1, Cp)  per-tile partial sums of (z_q - z)^2
    z = z_ref[...]
    e = e_ref[...]

    z_f32 = z.astype(jnp.float32)
    z_sq = jnp.sum(z_f32 * z_f32, axis=1, keepdims=True)              # (tn, 1)

    # Cross term on the MXU in the native input dtype, f32 accumulation.
    cross = jnp.dot(z, e.T, preferred_element_type=jnp.float32)       # (tn, K)
    dist = z_sq + esq_ref[...] - 2.0 * cross                          # (tn, K)

    # Nearest codebook entry, first-min tie-break (matches torch.argmin).
    idx = jnp.argmin(dist, axis=1, keepdims=True)                     # (tn, 1)

    # Gather via one-hot matmul (MXU-friendly, avoids dynamic gather).
    iota = jax.lax.broadcasted_iota(jnp.int32, dist.shape, 1)
    onehot = (idx == iota).astype(e.dtype)                            # (tn, K)
    zq = jnp.dot(onehot, e, preferred_element_type=jnp.float32)       # (tn, Cp)

    zq_ref[...] = zq.astype(zq_ref.dtype)

    # Per-tile partial squared error. Padded channels contribute exactly zero
    # (both z and z_q are zero there). Reduced to a scalar in the wrapper.
    diff = zq - z_f32
    err_ref[...] = jnp.sum(diff * diff, axis=0, keepdims=True)[None]


def _round_up(x, m):
    return (x + m - 1) // m * m


def _vmem_estimate(tn, k, c_pad, itemsize):
    z_io = 2 * tn * c_pad * itemsize          # double-buffered input tile
    zq_io = 2 * tn * c_pad * itemsize         # double-buffered output tile
    e_res = 2 * k * c_pad * itemsize          # codebook (constant index map)
    esq = 2 * _round_up(k, _LANE) * 4
    err_io = 2 * c_pad * 4
    work = tn * k * 4 + 4 * tn * c_pad * 4    # dist + f32 temporaries
    return z_io + zq_io + e_res + esq + err_io + work


def _pick_row_tile(n_rows, k, c_pad, itemsize, budget=24 * 1024 * 1024):
    for t in (1024, 512, 256, 128, 64, 32, 16, 8):
        if n_rows % t == 0 and _vmem_estimate(t, k, c_pad, itemsize) <= budget:
            return t
    return n_rows  # fall back to a single full-array tile (always legal)


def vector_quantizer_forward(z, emb_weight, beta=0.25, row_tile=None):
    """Forward pass of VectorQuantizer.

    Args:
      z: (B, C, H, W) float array (NCHW, matching PyTorch).
      emb_weight: (num_embeddings, C) codebook.
      beta: commitment weight.

    Returns:
      (z_q, loss) with z_q in NCHW and loss a scalar (forward value).
    """
    B, C, H, W = z.shape
    K, Ce = emb_weight.shape
    assert C == Ce, "Channels of z and codebook don't match"

    # NCHW -> NHWC -> (N, C), then zero-pad channels to a lane multiple so all
    # loads/stores are lane-dense and the MXU contraction is full width.
    c_pad = _round_up(max(C, _LANE), _LANE)
    z_flat = jnp.transpose(z, (0, 2, 3, 1)).reshape(-1, C)
    n_rows = z_flat.shape[0]
    if c_pad != C:
        z_flat = jnp.pad(z_flat, ((0, 0), (0, c_pad - C)))
        emb_pad = jnp.pad(emb_weight, ((0, 0), (0, c_pad - C)))
    else:
        emb_pad = emb_weight

    # Hoisted codebook squared norms (computed once, not per grid step).
    e_sq = jnp.sum(emb_pad.astype(jnp.float32) ** 2, axis=1)[None, :]  # (1, K)

    itemsize = jnp.dtype(z.dtype).itemsize
    tn = row_tile if row_tile is not None else _pick_row_tile(n_rows, K, c_pad, itemsize)
    assert n_rows % tn == 0, "row tile must divide B*H*W"
    n_tiles = n_rows // tn

    vmem_limit = int(min(
        max(2 * _vmem_estimate(tn, K, c_pad, itemsize), 16 * 1024 * 1024),
        48 * 1024 * 1024))

    # TODO(synk): for very large codebooks (K >= 4096), add a second grid axis
    # over K with an online running min/argmin in VMEM scratch to bound VMEM.
    zq_flat, err_part = pl.pallas_call(
        _vq_kernel,
        out_shape=(
            jax.ShapeDtypeStruct((n_rows, c_pad), z.dtype),
            jax.ShapeDtypeStruct((n_tiles, 1, c_pad), jnp.float32),
        ),
        grid_spec=pltpu.PrefetchScalarGridSpec(
            num_scalar_prefetch=0,
            grid=(n_tiles,),
            in_specs=[
                pl.BlockSpec((tn, c_pad), lambda i: (i, 0)),
                pl.BlockSpec((K, c_pad), lambda i: (0, 0)),
                pl.BlockSpec((1, K), lambda i: (0, 0)),
            ],
            out_specs=[
                pl.BlockSpec((tn, c_pad), lambda i: (i, 0)),
                pl.BlockSpec((1, 1, c_pad), lambda i: (i, 0, 0)),
            ],
        ),
        compiler_params=pltpu.CompilerParams(
            dimension_semantics=("parallel",),
            vmem_limit_bytes=vmem_limit,
        ),
    )(z_flat, emb_pad, e_sq)

    # (N, C_pad) -> drop channel padding -> NHWC -> NCHW
    z_q = jnp.transpose(zq_flat[:, :C].reshape(B, H, W, C), (0, 3, 1, 2))

    # Forward value of the loss:
    #   beta * mean((sg(z_q) - z)^2) + mean((z_q - sg(z))^2)
    # both terms have identical forward values -> (1 + beta) * MSE.
    n_elems = B * C * H * W
    mse = jnp.sum(err_part) / jnp.float32(n_elems)
    loss = (1.0 + beta) * mse

    # Straight-through estimator: value equals z_q, gradients flow through z.
    # (Forward-only kernel: codebook/commitment gradients are not provided.)
    z_q_out = z + jax.lax.stop_gradient(z_q - z)
    return z_q_out, loss


def _reference_forward(z, emb_weight, beta=0.25):
    B, C, H, W = z.shape
    z_flat = jnp.transpose(z, (0, 2, 3, 1)).reshape(-1, C)
    dist = (jnp.sum(z_flat ** 2, axis=1, keepdims=True)
            + jnp.sum(emb_weight ** 2, axis=1)
            - 2.0 * z_flat @ emb_weight.T)
    idx = jnp.argmin(dist, axis=1)
    zq_flat = emb_weight[idx]
    z_q = jnp.transpose(zq_flat.reshape(B, H, W, C), (0, 3, 1, 2))
    loss = (1.0 + beta) * jnp.mean((z_q - z) ** 2)
    return z_q, loss


if __name__ == "__main__":
    num_embeddings = 32
    emb_channels = 4
    beta = 0.25
    B, H, W = 2, 16, 16

    key = jax.random.PRNGKey(0)
    kz, kw = jax.random.split(key)

    z = jax.random.normal(kz, (B, emb_channels, H, W), dtype=jnp.float32)
    # nn.Embedding weight init: uniform(-1/K, 1/K)
    emb_weight = jax.random.uniform(
        kw, (num_embeddings, emb_channels), dtype=jnp.float32,
        minval=-1.0 / num_embeddings, maxval=1.0 / num_embeddings)

    z_q, loss = vector_quantizer_forward(z, emb_weight, beta=beta)
    jax.block_until_ready(z_q)
    jax.block_until_ready(loss)

    z_q_ref, loss_ref = _reference_forward(z, emb_weight, beta=beta)
    assert jnp.allclose(z_q, z_q_ref, atol=1e-5, rtol=1e-5)
    assert jnp.allclose(loss, loss_ref, atol=1e-5, rtol=1e-5)

    print("KERNEL_OK")
</pallas_src>

<mosaic_0001>
module attributes {stable_mosaic.version = 11 : i64} {
  func.func @_vq_kernel(%arg0: i32, %arg1: memref<512x128xf32, #tpu.memory_space<vmem>>, %arg2: memref<32x128xf32, #tpu.memory_space<vmem>>, %arg3: memref<1x32xf32, #tpu.memory_space<vmem>>, %arg4: memref<512x128xf32, #tpu.memory_space<vmem>>, %arg5: memref<1x1x128xf32, #tpu.memory_space<vmem>>) attributes {dimension_semantics = [#tpu.dimension_semantics<parallel>], iteration_bounds = array<i64: 1>, scalar_prefetch = 0 : i64, scratch_operands = 0 : i64, tpu.core_type = #tpu.core_type<tc>, window_params = [{transform_indices = @transform_0, window_bounds = array<i64: 512, 128>}, {pipeline_mode = #tpu.pipeline_mode<synchronous>, transform_indices = @transform_1, window_bounds = array<i64: 32, 128>}, {pipeline_mode = #tpu.pipeline_mode<synchronous>, transform_indices = @transform_2, window_bounds = array<i64: 1, 32>}, {transform_indices = @transform_3, window_bounds = array<i64: 512, 128>}, {transform_indices = @transform_4, window_bounds = array<i64: 1, 1, 128>}]} {
    %c0 = arith.constant 0 : index
    %c0_0 = arith.constant 0 : index
    %0 = vector.load %arg1[%c0, %c0_0] : memref<512x128xf32, #tpu.memory_space<vmem>>, vector<512x128xf32>
    %c0_1 = arith.constant 0 : index
    %c0_2 = arith.constant 0 : index
    %1 = vector.load %arg2[%c0_1, %c0_2] : memref<32x128xf32, #tpu.memory_space<vmem>>, vector<32x128xf32>
    %2 = arith.mulf %0, %0 : vector<512x128xf32>
    %cst = arith.constant dense<0.000000e+00> : vector<512xf32>
    %3 = vector.multi_reduction <add>, %2, %cst [1] : vector<512x128xf32> to vector<512xf32>
    %4 = vector.shape_cast %3 : vector<512xf32> to vector<512x1xf32>
    %5 = tpu.transpose %1, [1, 0] : vector<32x128xf32> -> vector<128x32xf32>
    %cst_3 = arith.constant dense<0.000000e+00> : vector<512x32xf32>
    %6 = tpu.matmul %0, %5, %cst_3 {dimension_numbers = #tpu.dot_dimension_numbers<[1], [0], [0], [1], [0, 0, 1, 1], [], []>} : vector<512x128xf32>, vector<128x32xf32>, vector<512x32xf32> -> vector<512x32xf32>
    %c0_4 = arith.constant 0 : index
    %c0_5 = arith.constant 0 : index
    %7 = vector.load %arg3[%c0_4, %c0_5] : memref<1x32xf32, #tpu.memory_space<vmem>>, vector<1x32xf32>
    %8 = vector.broadcast %4 : vector<512x1xf32> to vector<512x32xf32>
    %9 = vector.broadcast %7 : vector<1x32xf32> to vector<512x32xf32>
    %10 = arith.addf %8, %9 : vector<512x32xf32>
    %cst_6 = arith.constant 2.000000e+00 : f32
    %11 = vector.broadcast %cst_6 : f32 to vector<512x32xf32>
    %12 = arith.mulf %11, %6 : vector<512x32xf32>
    %13 = arith.subf %10, %12 : vector<512x32xf32>
    %14 = tpu.reduce_index %13 {axis = 1 : i32, kind = #tpu.reduction_kind<arg_min>} : vector<512x32xf32> -> vector<512xi32>
    %15 = vector.shape_cast %14 : vector<512xi32> to vector<512x1xi32>
    %16 = tpu.iota {dimensions = array<i32: 1>} : vector<512x32xi32>
    %17 = vector.broadcast %15 : vector<512x1xi32> to vector<512x32xi32>
    %18 = arith.cmpi eq, %17, %16 : vector<512x32xi32>
    %19 = arith.extui %18 : vector<512x32xi1> to vector<512x32xi32>
    %20 = arith.sitofp %19 : vector<512x32xi32> to vector<512x32xf32>
    %cst_7 = arith.constant dense<0.000000e+00> : vector<512x128xf32>
    %21 = tpu.matmul %20, %1, %cst_7 {dimension_numbers = #tpu.dot_dimension_numbers<[1], [0], [0], [1], [0, 0, 1, 1], [], []>} : vector<512x32xf32>, vector<32x128xf32>, vector<512x128xf32> -> vector<512x128xf32>
    %c0_8 = arith.constant 0 : index
    %c0_9 = arith.constant 0 : index
    %22 = vector.load %arg4[%c0_8, %c0_9] : memref<512x128xf32, #tpu.memory_space<vmem>>, vector<512x128xf32>
    tpu.vector_store %arg4[%c0_8, %c0_9], %21 {strides = array<i32>} : memref<512x128xf32, #tpu.memory_space<vmem>>, vector<512x128xf32>,
    %23 = arith.subf %21, %0 : vector<512x128xf32>
    %24 = arith.mulf %23, %23 : vector<512x128xf32>
    %cst_10 = arith.constant dense<0.000000e+00> : vector<128xf32>
    %25 = vector.multi_reduction <add>, %24, %cst_10 [0] : vector<512x128xf32> to vector<128xf32>
    %26 = vector.shape_cast %25 : vector<128xf32> to vector<1x128xf32>
    %27 = vector.shape_cast %26 : vector<1x128xf32> to vector<1x1x128xf32>
    %c0_11 = arith.constant 0 : index
    %c0_12 = arith.constant 0 : index
    %c0_13 = arith.constant 0 : index
    %28 = vector.load %arg5[%c0_11, %c0_12, %c0_13] : memref<1x1x128xf32, #tpu.memory_space<vmem>>, vector<1x1x128xf32>
    tpu.vector_store %arg5[%c0_11, %c0_12, %c0_13], %27 {strides = array<i32>} : memref<1x1x128xf32, #tpu.memory_space<vmem>>, vector<1x1x128xf32>,
    return
  }
  func.func @transform_0(%arg0: i32) -> (i32, i32) {
    %c0_i32 = arith.constant 0 : i32
    %c0_i32_0 = arith.constant 0 : i32
    return %arg0, %c0_i32 : i32, i32
  }
  func.func @transform_1(%arg0: i32) -> (i32, i32) {
    %c0_i32 = arith.constant 0 : i32
    %c0_i32_0 = arith.constant 0 : i32
    %c0_i32_1 = arith.constant 0 : i32
    return %c0_i32, %c0_i32_0 : i32, i32
  }
  func.func @transform_2(%arg0: i32) -> (i32, i32) {
    %c0_i32 = arith.constant 0 : i32
    %c0_i32_0 = arith.constant 0 : i32
    %c0_i32_1 = arith.constant 0 : i32
    return %c0_i32, %c0_i32_0 : i32, i32
  }
  func.func @transform_3(%arg0: i32) -> (i32, i32) {
    %c0_i32 = arith.constant 0 : i32
    %c0_i32_0 = arith.constant 0 : i32
    return %arg0, %c0_i32 : i32, i32
  }
  func.func @transform_4(%arg0: i32) -> (i32, i32, i32) {
    %c0_i32 = arith.constant 0 : i32
    %c0_i32_0 = arith.constant 0 : i32
    %c0_i32_1 = arith.constant 0 : i32
    return %arg0, %c0_i32, %c0_i32_0 : i32, i32, i32
  }
}

</mosaic_0001>

<bundles_post_ra>
// kernel: tpu_custom_call.1
= control target key start
LH: loop header
LB: loop body
LE: loop exit
PB: predicated region body
PF: predicated region fallthrough
CT: control target
= control target key end

     0   :  { %10 = vsyncpa [#allocation3], 0  ;;  %s3340_s0 = inlined_call_operand.hbm [shape: f32[512,128], index: 0, kind: input, shape index: {}]   ;;  %s3341_s1 = inlined_call_operand.hbm [shape: f32[32,128], index: 1, kind: input, shape index: {}]   ;;  %s3342_s2 = inlined_call_operand.vmem [shape: f32[1,32], index: 2, kind: input, shape index: {}]   ;;  %s3343_s3 = inlined_call_operand.hbm [shape: f32[512,128], index: 3, kind: output, shape index: {0}]   ;;  %s3344_s4 = inlined_call_operand.hbm [shape: f32[1,1,128], index: 4, kind: output, shape index: {1}]  }
   0x1   :  { %11 = vsyncpa [#allocation6], 0 }
   0x2   :  { %12 = vsyncpa [#allocation4], 0 }
   0x3   :  { %13 = vsyncpa [#allocation9], 0  ;;  %s2804_s15 = smov [#allocation2]   ;;  %s2708_s19 = scalar_lea.hbm %s3340_s0, 8192 }
   0x4   :  { %s19_s16 = sshll.u32 %s2804_s15, 4  ;;  %p2709_p0 = scmp.ne.s32.totalorder %s3340_s0, %s2708_s19  ;;  %s20_s16 = int_to_ptr.vmem [resolvable:$true] %s19_s16 }
   0x5   :  { %p2712_p1 = scmp.lt.u32.totalorder %s2708_s19, %s3340_s0 }
   0x7   :  { %p2714_p2 = pnand %p2712_p1, %p2709_p0 }
   0x9   :  { %2717 = shalt.err (!%p2714_p2)
}
   0xa   :  { %s2718_s24 = scalar_lea.vmem %s20_s16, 8192  ;;  %p2723_p4 = scmp.lt.s32.totalorder %s20_s16, %s20_s16 }
   0xb   :  { %p2719_p3 = scmp.ne.s32.totalorder %s20_s16, %s2718_s24  ;;  %p2724_p5 = scmp.lt.s32.totalorder %s2718_s24, %s2718_s24 }
   0xd   :  { %p2725_p6 = por %p2724_p5, %p2723_p4 }
   0xf   :  { %p2726_p7 = pnand %p2725_p6, %p2719_p3 }
  0x11   :  { %2729 = shalt.err (!%p2726_p7)
}
  0x12   :  { %s2805_s25 = smov 128   ;;  %s2806_s26 = smov 8  }
  0x13   :  { %25 = dma.hbm_to_vmem [thread:$0]  %s3340_s0, 8192, %s20_s16, [#allocation3], %s2805_s25, %s2805_s25, %s2806_s26  }
  0x14   :  { %s2807_s29 = smov [#allocation5]   ;;  %s2730_s7 = scalar_lea.hbm %s3341_s1, 512 }
  0x15   :  { %s31_s30 = sshll.u32 %s2807_s29, 4  ;;  %p2731_p8 = scmp.ne.s32.totalorder %s3341_s1, %s2730_s7  ;;  %s32_s30 = int_to_ptr.vmem [resolvable:$true] %s31_s30 }
  0x16   :  { %p2734_p9 = scmp.lt.u32.totalorder %s2730_s7, %s3341_s1 }
  0x18   :  { %p2736_p10 = pnand %p2734_p9, %p2731_p8 }
  0x1a   :  { %2739 = shalt.err (!%p2736_p10)
}
  0x1b   :  { %s2740_s12 = scalar_lea.vmem %s32_s30, 512  ;;  %p2745_p12 = scmp.lt.s32.totalorder %s32_s30, %s32_s30 }
  0x1c   :  { %p2741_p11 = scmp.ne.s32.totalorder %s32_s30, %s2740_s12  ;;  %p2746_p13 = scmp.lt.s32.totalorder %s2740_s12, %s2740_s12 }
  0x1e   :  { %p2747_p0 = por %p2746_p13, %p2745_p12 }
  0x20   :  { %p2748_p1 = pnand %p2747_p0, %p2741_p11 }
  0x22   :  { %2751 = shalt.err (!%p2748_p1)
}
  0x23   :  { %37 = dma.hbm_to_vmem [thread:$0]  %s3341_s1, 512, %s32_s30, [#allocation6], %s2805_s25, %s2805_s25, %s2806_s26  }
  0x24   :  { %2796 = dma.done.wait [#allocation3], 8192  }
  0x25   :  { %2797 = vsyncadd [#allocation3], 4294959104 }
  0x26   :  { %2798 = dma.done.wait [#allocation6], 512  }
  0x27   :  { %2799 = vsyncadd [#allocation6], 4294966784  ;;  %v110_v0 = vld [vmem:[#allocation5] sm:$0xff]  ;;  %v111_v1 = vld [vmem:[#allocation5 + $0x8] sm:$0xff]  ;;  %vm890_vm0 = vcmask 261120  }
  0x28   :  { %v112_v2 = vld [vmem:[#allocation5 + $0x10] sm:$0xff]  ;;  %v2621_v3 = vpack.c.bf16 %v111_v1, %v110_v0  ;;  %v113_v4 = vld [vmem:[#allocation5 + $0x18] sm:$0xff]  ;;  %v46_v5 = vld [vmem:[#allocation2] sm:$0xff] }
  0x29   :  { %v2625_v6 = vpack.c.bf16 %v113_v4, %v112_v2  ;;  %2421 = vmatprep.mubr.f32.mxu0 %v46_v5  ;;  %v48_v7 = vld [vmem:[#allocation2 + $0x10] sm:$0xff]  ;;  %v114_v8 = vmul.f32 %v46_v5, %v46_v5  ;;  %v47_v9 = vld [vmem:[#allocation2 + $0x8] sm:$0xff]  ;;  %v49_v11 = vld [vmem:[#allocation2 + $0x18] sm:$0xff] }
  0x2a   :  { %2622 = vmatprep.subr.bf16.mxu0 %v2621_v3  ;;  %v116_v10 = vmul.f32 %v48_v7, %v48_v7  ;;  %2630 = vmatprep.subr.bf16.mxu1 %v2621_v3  ;;  %v115_v12 = vmul.f32 %v47_v9, %v47_v9  ;;  %v117_v13 = vmul.f32 %v49_v11, %v49_v11  ;;  %v50_v14 = vld [vmem:[#allocation2 + $0x20] sm:$0xff]  ;;  %v51_v15 = vld [vmem:[#allocation2 + $0x28] sm:$0xff]  ;;  %v52_v18 = vld [vmem:[#allocation2 + $0x30] sm:$0xff] }
  0x2b   :  { %2624 = vmatpush3.bf16.xpose.msra.mxu0 %v2621_v3  ;;  %178 = vadd.xlane.f32.xlu0 %v114_v8  ;;  %v118_v16 = vmul.f32 %v50_v14, %v50_v14  ;;  %v119_v17 = vmul.f32 %v51_v15, %v51_v15  ;;  %v53_v19 = vld [vmem:[#allocation2 + $0x38] sm:$0xff]  ;;  %v120_v20 = vmul.f32 %v52_v18, %v52_v18  ;;  %v54_v22 = vld [vmem:[#allocation2 + $0x40] sm:$0xff]  ;;  %v55_v23 = vld [vmem:[#allocation2 + $0x48] sm:$0xff] }
  0x2c   :  { %2626 = vmatprep.subr.bf16.mxu0 %v2625_v6  ;;  %182 = vadd.xlane.f32.xlu1 %v116_v10  ;;  %v121_v21 = vmul.f32 %v53_v19, %v53_v19  ;;  %v122_v24 = vmul.f32 %v54_v22, %v54_v22  ;;  %v123_v25 = vmul.f32 %v55_v23, %v55_v23  ;;  %v56_v26 = vld [vmem:[#allocation2 + $0x50] sm:$0xff]  ;;  %v57_v27 = vld [vmem:[#allocation2 + $0x58] sm:$0xff]  ;;  %v58_v30 = vld [vmem:[#allocation2 + $0x60] sm:$0xff] }
  0x2d   :  { %2632 = vmatpush3.bf16.msra.mxu1 %v2621_v3  ;;  %v124_v28 = vmul.f32 %v56_v26, %v56_v26  ;;  %v125_v29 = vmul.f32 %v57_v27, %v57_v27  ;;  %v59_v31 = vld [vmem:[#allocation2 + $0x68] sm:$0xff]  ;;  %v126_v32 = vmul.f32 %v58_v30, %v58_v30  ;;  %v60_v34 = vld [vmem:[#allocation2 + $0x70] sm:$0xff]  ;;  %v61_v35 = vld [vmem:[#allocation2 + $0x78] sm:$0xff] }
  0x2e   :  { %2634 = vmatprep.subr.bf16.mxu1 %v2625_v6  ;;  %v127_v33 = vmul.f32 %v59_v31, %v59_v31  ;;  %v128_v36 = vmul.f32 %v60_v34, %v60_v34  ;;  %v129_v37 = vmul.f32 %v61_v35, %v61_v35  ;;  %v62_v38 = vld [vmem:[#allocation2 + $0x80] sm:$0xff]  ;;  %v63_v39 = vld [vmem:[#allocation2 + $0x88] sm:$0xff]  ;;  %v64_v42 = vld [vmem:[#allocation2 + $0x90] sm:$0xff] }
  0x2f   :  { %180 = vadd.xlane.f32.xlu0 %v115_v12  ;;  %v130_v40 = vmul.f32 %v62_v38, %v62_v38  ;;  %v131_v41 = vmul.f32 %v63_v39, %v63_v39  ;;  %v65_v43 = vld [vmem:[#allocation2 + $0x98] sm:$0xff]  ;;  %v132_v44 = vmul.f32 %v64_v42, %v64_v42  ;;  %v66_v46 = vld [vmem:[#allocation2 + $0xa0] sm:$0xff]  ;;  %v67_v47 = vld [vmem:[#allocation2 + $0xa8] sm:$0xff] }
  0x30   :  { %184 = vadd.xlane.f32.xlu1 %v117_v13  ;;  %v133_v45 = vmul.f32 %v65_v43, %v65_v43  ;;  %v134_v48 = vmul.f32 %v66_v46, %v66_v46  ;;  %v135_v49 = vmul.f32 %v67_v47, %v67_v47  ;;  %v68_v50 = vld [vmem:[#allocation2 + $0xb0] sm:$0xff]  ;;  %v69_v51 = vld [vmem:[#allocation2 + $0xb8] sm:$0xff]  ;;  %v70_v54 = vld [vmem:[#allocation2 + $0xc0] sm:$0xff] }
  0x31   :  { %2636 = vmatpush3.bf16.msra.mxu1 %v2625_v6  ;;  %v136_v52 = vmul.f32 %v68_v50, %v68_v50  ;;  %v137_v53 = vmul.f32 %v69_v51, %v69_v51  ;;  %v71_v55 = vld [vmem:[#allocation2 + $0xc8] sm:$0xff]  ;;  %v138_v56 = vmul.f32 %v70_v54, %v70_v54  ;;  %v72_v58 = vld [vmem:[#allocation2 + $0xd0] sm:$0xff]  ;;  %v73_v59 = vld [vmem:[#allocation2 + $0xd8] sm:$0xff] }
  0x32   :  { %v139_v57 = vmul.f32 %v71_v55, %v71_v55  ;;  %v140_v60 = vmul.f32 %v72_v58, %v72_v58  ;;  %v141_v61 = vmul.f32 %v73_v59, %v73_v59  ;;  %v74_v62 = vld [vmem:[#allocation2 + $0xe0] sm:$0xff]  ;;  %v75_v63 = vld [vmem:[#allocation2 + $0xe8] sm:$0xff]  ;;  %v76_v2 = vld [vmem:[#allocation2 + $0xf0] sm:$0xff] }
  0x33   :  { %2628 = vmatpush3.bf16.xpose.msra.mxu0 %v2625_v6  ;;  %186 = vadd.xlane.f32.xlu0 %v118_v16  ;;  %v142_v0 = vmul.f32 %v74_v62, %v74_v62  ;;  %v143_v1 = vmul.f32 %v75_v63, %v75_v63  ;;  %v77_v3 = vld [vmem:[#allocation2 + $0xf8] sm:$0xff]  ;;  %v144_v4 = vmul.f32 %v76_v2, %v76_v2  ;;  %v78_v6 = vld [vmem:[#allocation2 + $0x100] sm:$0xff]  ;;  %v80_v10 = vld [vmem:[#allocation2 + $0x110] sm:$0xff] }
  0x34   :  { %188 = vadd.xlane.f32.xlu1 %v119_v17  ;;  %v145_v5 = vmul.f32 %v77_v3, %v77_v3  ;;  %v146_v8 = vmul.f32 %v78_v6, %v78_v6  ;;  %v148_v12 = vmul.f32 %v80_v10, %v80_v10 }
  0x37   :  { %190 = vadd.xlane.f32.xlu0 %v120_v20 }
  0x38   :  { %192 = vadd.xlane.f32.xlu1 %v121_v21 }
  0x3a   :  { %2422 = vmatmul.mubr.f32.vlgmr.msra.gmra.mrb[0].mxu0 %v47_v9 }
  0x3b   :  { %2424 = vmatprep.mubr.f32.mxu0 %v48_v7  ;;  %194 = vadd.xlane.f32.xlu0 %v122_v24  ;;  %v79_v7 = vld [vmem:[#allocation2 + $0x108] sm:$0xff] }
  0x3c   :  { %196 = vadd.xlane.f32.xlu1 %v123_v25  ;;  %v147_v9 = vmul.f32 %v79_v7, %v79_v7 }
  0x3e   :  { %2425 = vmatmul.mubr.f32.gmra.mrb[2].mxu0 %v49_v11  ;;  %v81_v11 = vld [vmem:[#allocation2 + $0x118] sm:$0xff] }
  0x3f   :  { %2427 = vmatprep.mubr.f32.mxu0 %v50_v14  ;;  %198 = vadd.xlane.f32.xlu0 %v124_v28  ;;  %v149_v13 = vmul.f32 %v81_v11, %v81_v11  ;;  %v82_v14 = vld [vmem:[#allocation2 + $0x120] sm:$0xff] }
  0x40   :  { %200 = vadd.xlane.f32.xlu1 %v125_v29  ;;  %v150_v16 = vmul.f32 %v82_v14, %v82_v14 }
  0x42   :  { %2428 = vmatmul.mubr.f32.gmra.mrb[4].mxu0 %v51_v15  ;;  %v83_v15 = vld [vmem:[#allocation2 + $0x128] sm:$0xff] }
  0x43   :  { %2430 = vmatprep.mubr.f32.mxu0 %v52_v18  ;;  %202 = vadd.xlane.f32.xlu0 %v126_v32  ;;  %v151_v17 = vmul.f32 %v83_v15, %v83_v15  ;;  %v84_v18 = vld [vmem:[#allocation2 + $0x130] sm:$0xff] }
  0x44   :  { %204 = vadd.xlane.f32.xlu1 %v127_v33  ;;  %v152_v20 = vmul.f32 %v84_v18, %v84_v18 }
  0x46   :  { %2431 = vmatmul.mubr.f32.gmra.mrb[6].mxu0 %v53_v19  ;;  %v85_v19 = vld [vmem:[#allocation2 + $0x138] sm:$0xff] }
  0x47   :  { %2433 = vmatprep.mubr.f32.mxu0 %v54_v22  ;;  %206 = vadd.xlane.f32.xlu0 %v128_v36  ;;  %v153_v21 = vmul.f32 %v85_v19, %v85_v19  ;;  %v86_v22 = vld [vmem:[#allocation2 + $0x140] sm:$0xff] }
  0x48   :  { %208 = vadd.xlane.f32.xlu1 %v129_v37  ;;  %v154_v24 = vmul.f32 %v86_v22, %v86_v22 }
  0x4a   :  { %2434 = vmatmul.mubr.f32.gmra.mrb[8].mxu0 %v55_v23  ;;  %v87_v23 = vld [vmem:[#allocation2 + $0x148] sm:$0xff] }
  0x4b   :  { %2436 = vmatprep.mubr.f32.mxu0 %v56_v26  ;;  %210 = vadd.xlane.f32.xlu0 %v130_v40  ;;  %v155_v25 = vmul.f32 %v87_v23, %v87_v23  ;;  %v88_v26 = vld [vmem:[#allocation2 + $0x150] sm:$0xff] }
  0x4c   :  { %212 = vadd.xlane.f32.xlu1 %v131_v41  ;;  %v156_v28 = vmul.f32 %v88_v26, %v88_v26 }
  0x4e   :  { %2437 = vmatmul.mubr.f32.gmra.mrb[10].mxu0 %v57_v27  ;;  %v89_v27 = vld [vmem:[#allocation2 + $0x158] sm:$0xff] }
  0x4f   :  { %2439 = vmatprep.mubr.f32.mxu0 %v58_v30  ;;  %214 = vadd.xlane.f32.xlu0 %v132_v44  ;;  %v157_v29 = vmul.f32 %v89_v27, %v89_v27  ;;  %v90_v30 = vld [vmem:[#allocation2 + $0x160] sm:$0xff] }
  0x50   :  { %216 = vadd.xlane.f32.xlu1 %v133_v45  ;;  %v158_v32 = vmul.f32 %v90_v30, %v90_v30 }
  0x52   :  { %2440 = vmatmul.mubr.f32.gmra.mrb[12].mxu0 %v59_v31  ;;  %v91_v31 = vld [vmem:[#allocation2 + $0x168] sm:$0xff] }
  0x53   :  { %2442 = vmatprep.mubr.f32.mxu0 %v60_v34  ;;  %218 = vadd.xlane.f32.xlu0 %v134_v48  ;;  %v159_v33 = vmul.f32 %v91_v31, %v91_v31  ;;  %v92_v34 = vld [vmem:[#allocation2 + $0x170] sm:$0xff] }
  0x54   :  { %220 = vadd.xlane.f32.xlu1 %v135_v49  ;;  %v160_v36 = vmul.f32 %v92_v34, %v92_v34 }
  0x56   :  { %2443 = vmatmul.mubr.f32.gmra.mrb[14].mxu0 %v61_v35  ;;  %v93_v35 = vld [vmem:[#allocation2 + $0x178] sm:$0xff] }
  0x57   :  { %2445 = vmatprep.mubr.f32.mxu0 %v62_v38  ;;  %222 = vadd.xlane.f32.xlu0 %v136_v52  ;;  %v161_v37 = vmul.f32 %v93_v35, %v93_v35  ;;  %v94_v38 = vld [vmem:[#allocation2 + $0x180] sm:$0xff] }
  0x58   :  { %224 = vadd.xlane.f32.xlu1 %v137_v53  ;;  %v162_v40 = vmul.f32 %v94_v38, %v94_v38 }
  0x5a   :  { %2446 = vmatmul.mubr.f32.gmra.mrb[16].mxu0 %v63_v39  ;;  %v95_v39 = vld [vmem:[#allocation2 + $0x188] sm:$0xff] }
  0x5b   :  { %2448 = vmatprep.mubr.f32.mxu0 %v64_v42  ;;  %226 = vadd.xlane.f32.xlu0 %v138_v56  ;;  %v163_v41 = vmul.f32 %v95_v39, %v95_v39  ;;  %v96_v42 = vld [vmem:[#allocation2 + $0x190] sm:$0xff] }
  0x5c   :  { %228 = vadd.xlane.f32.xlu1 %v139_v57  ;;  %v164_v44 = vmul.f32 %v96_v42, %v96_v42 }
  0x5e   :  { %2449 = vmatmul.mubr.f32.gmra.mrb[18].mxu0 %v65_v43  ;;  %v97_v43 = vld [vmem:[#allocation2 + $0x198] sm:$0xff] }
  0x5f   :  { %2451 = vmatprep.mubr.f32.mxu0 %v66_v46  ;;  %230 = vadd.xlane.f32.xlu0 %v140_v60  ;;  %v165_v45 = vmul.f32 %v97_v43, %v97_v43  ;;  %v98_v46 = vld [vmem:[#allocation2 + $0x1a0] sm:$0xff] }
  0x60   :  { %232 = vadd.xlane.f32.xlu1 %v141_v61  ;;  %v166_v48 = vmul.f32 %v98_v46, %v98_v46 }
  0x62   :  { %2452 = vmatmul.mubr.f32.gmra.mrb[20].mxu0 %v67_v47  ;;  %v99_v47 = vld [vmem:[#allocation2 + $0x1a8] sm:$0xff] }
  0x63   :  { %2454 = vmatprep.mubr.f32.mxu0 %v68_v50  ;;  %234 = vadd.xlane.f32.xlu0 %v142_v0  ;;  %v167_v49 = vmul.f32 %v99_v47, %v99_v47  ;;  %v100_v50 = vld [vmem:[#allocation2 + $0x1b0] sm:$0xff] }
  0x64   :  { %236 = vadd.xlane.f32.xlu1 %v143_v1  ;;  %v168_v52 = vmul.f32 %v100_v50, %v100_v50 }
  0x66   :  { %2455 = vmatmul.mubr.f32.gmra.mrb[22].mxu0 %v69_v51  ;;  %v101_v51 = vld [vmem:[#allocation2 + $0x1b8] sm:$0xff] }
  0x67   :  { %2457 = vmatprep.mubr.f32.mxu0 %v70_v54  ;;  %238 = vadd.xlane.f32.xlu0 %v144_v4  ;;  %v169_v53 = vmul.f32 %v101_v51, %v101_v51  ;;  %v102_v54 = vld [vmem:[#allocation2 + $0x1c0] sm:$0xff] }
  0x68   :  { %240 = vadd.xlane.f32.xlu1 %v145_v5  ;;  %v170_v56 = vmul.f32 %v102_v54, %v102_v54 }
  0x6a   :  { %2458 = vmatmul.mubr.f32.gmra.mrb[24].mxu0 %v71_v55  ;;  %v103_v55 = vld [vmem:[#allocation2 + $0x1c8] sm:$0xff] }
  0x6b   :  { %2460 = vmatprep.mubr.f32.mxu0 %v72_v58  ;;  %242 = vadd.xlane.f32.xlu0 %v146_v8  ;;  %v171_v57 = vmul.f32 %v103_v55, %v103_v55  ;;  %v104_v58 = vld [vmem:[#allocation2 + $0x1d0] sm:$0xff] }
  0x6c   :  { %244 = vadd.xlane.f32.xlu1 %v147_v9  ;;  %v172_v60 = vmul.f32 %v104_v58, %v104_v58 }
  0x6e   :  { %2461 = vmatmul.mubr.f32.gmra.mrb[26].mxu0 %v73_v59  ;;  %v105_v59 = vld [vmem:[#allocation2 + $0x1d8] sm:$0xff] }
  0x6f   :  { %2463 = vmatprep.mubr.f32.mxu0 %v74_v62  ;;  %246 = vadd.xlane.f32.xlu0 %v148_v12  ;;  %v173_v61 = vmul.f32 %v105_v59, %v105_v59  ;;  %v106_v62 = vld [vmem:[#allocation2 + $0x1e0] sm:$0xff] }
  0x70   :  { %248 = vadd.xlane.f32.xlu1 %v149_v13  ;;  %v174_v0 = vmul.f32 %v106_v62, %v106_v62 }
  0x72   :  { %2464 = vmatmul.mubr.f32.gmra.mrb[28].mxu0 %v75_v63  ;;  %v107_v63 = vld [vmem:[#allocation2 + $0x1e8] sm:$0xff] }
  0x73   :  { %2466 = vmatprep.mubr.f32.mxu0 %v76_v2  ;;  %250 = vadd.xlane.f32.xlu0 %v150_v16  ;;  %v175_v1 = vmul.f32 %v107_v63, %v107_v63  ;;  %v108_v2 = vld [vmem:[#allocation2 + $0x1f0] sm:$0xff] }
  0x74   :  { %252 = vadd.xlane.f32.xlu1 %v151_v17  ;;  %v176_v4 = vmul.f32 %v108_v2, %v108_v2 }
  0x76   :  { %2467 = vmatmul.mubr.f32.gmra.mrb[30].mxu0 %v77_v3  ;;  %v109_v3 = vld [vmem:[#allocation2 + $0x1f8] sm:$0xff] }
  0x77   :  { %2469 = vmatprep.mubr.f32.mxu0 %v78_v6  ;;  %254 = vadd.xlane.f32.xlu0 %v152_v20  ;;  %v177_v5 = vmul.f32 %v109_v3, %v109_v3 }
  0x78   :  { %256 = vadd.xlane.f32.xlu1 %v153_v21 }
  0x7a   :  { %2470 = vmatmul.mubr.f32.gmra.mrb[32].mxu0 %v79_v7 }
  0x7b   :  { %2472 = vmatprep.mubr.f32.mxu0 %v80_v10  ;;  %258 = vadd.xlane.f32.xlu0 %v154_v24 }
  0x7c   :  { %260 = vadd.xlane.f32.xlu1 %v155_v25 }
  0x7e   :  { %2473 = vmatmul.mubr.f32.gmra.mrb[34].mxu0 %v81_v11 }
  0x7f   :  { %2475 = vmatprep.mubr.f32.mxu0 %v82_v14  ;;  %262 = vadd.xlane.f32.xlu0 %v156_v28  ;;  %v2897_v28 = vld [vmem:[%s3342_s2] ss:$0 sm:$0xff]  ;;  %s2809_s2 = smov [#allocation7]  }
  0x80   :  { %264 = vadd.xlane.f32.xlu1 %v157_v29  ;;  %s2121_s15 = sshll.u32 %s2809_s2, 4  ;;  %s2122_s15 = int_to_ptr.vmem [resolvable:$true] %s2121_s15 }
  0x81   :  { %s2752_s16 = scalar_lea.vmem %s2122_s15, 8192  ;;  %p2757_p3 = scmp.lt.s32.totalorder %s2122_s15, %s2122_s15 }
  0x82   :  { %2476 = vmatmul.mubr.f32.gmra.mrb[36].mxu0 %v83_v15  ;;  %p2753_p2 = scmp.ne.s32.totalorder %s2122_s15, %s2752_s16  ;;  %p2758_p4 = scmp.lt.s32.totalorder %s2752_s16, %s2752_s16 }
  0x83   :  { %2478 = vmatprep.mubr.f32.mxu0 %v84_v18  ;;  %266 = vadd.xlane.f32.xlu0 %v158_v32 }
  0x84   :  { %268 = vadd.xlane.f32.xlu1 %v159_v33  ;;  %p2759_p5 = por %p2758_p4, %p2757_p3 }
  0x86   :  { %2479 = vmatmul.mubr.f32.gmra.mrb[38].mxu0 %v85_v19  ;;  %p2760_p6 = pnand %p2759_p5, %p2753_p2 }
  0x87   :  { %2481 = vmatprep.mubr.f32.mxu0 %v86_v22  ;;  %270 = vadd.xlane.f32.xlu0 %v160_v36 }
  0x88   :  { %272 = vadd.xlane.f32.xlu1 %v161_v37 }
  0x8a   :  { %2482 = vmatmul.mubr.f32.gmra.mrb[40].mxu0 %v87_v23 }
  0x8b   :  { %2484 = vmatprep.mubr.f32.mxu0 %v88_v26  ;;  %274 = vadd.xlane.f32.xlu0 %v162_v40 }
  0x8c   :  { %276 = vadd.xlane.f32.xlu1 %v163_v41 }
  0x8e   :  { %2485 = vmatmul.mubr.f32.gmra.mrb[42].mxu0 %v89_v27 }
  0x8f   :  { %2487 = vmatprep.mubr.f32.mxu0 %v90_v30  ;;  %278 = vadd.xlane.f32.xlu0 %v164_v44 }
  0x90   :  { %280 = vadd.xlane.f32.xlu1 %v165_v45 }
  0x92   :  { %2488 = vmatmul.mubr.f32.gmra.mrb[44].mxu0 %v91_v31 }
  0x93   :  { %2490 = vmatprep.mubr.f32.mxu0 %v92_v34  ;;  %282 = vadd.xlane.f32.xlu0 %v166_v48 }
  0x94   :  { %284 = vadd.xlane.f32.xlu1 %v167_v49 }
  0x96   :  { %2491 = vmatmul.mubr.f32.gmra.mrb[46].mxu0 %v93_v35 }
  0x97   :  { %2493 = vmatprep.mubr.f32.mxu0 %v94_v38  ;;  %286 = vadd.xlane.f32.xlu0 %v168_v52 }
  0x98   :  { %288 = vadd.xlane.f32.xlu1 %v169_v53 }
  0x9a   :  { %2494 = vmatmul.mubr.f32.gmra.mrb[48].mxu0 %v95_v39 }
  0x9b   :  { %2496 = vmatprep.mubr.f32.mxu0 %v96_v42  ;;  %290 = vadd.xlane.f32.xlu0 %v170_v56 }
  0x9c   :  { %292 = vadd.xlane.f32.xlu1 %v171_v57 }
  0x9e   :  { %2497 = vmatmul.mubr.f32.gmra.mrb[50].mxu0 %v97_v43 }
  0x9f   :  { %2499 = vmatprep.mubr.f32.mxu0 %v98_v46  ;;  %294 = vadd.xlane.f32.xlu0 %v172_v60 }
  0xa0   :  { %296 = vadd.xlane.f32.xlu1 %v173_v61 }
  0xa2   :  { %2500 = vmatmul.mubr.f32.gmra.mrb[52].mxu0 %v99_v47 }
  0xa3   :  { %2502 = vmatprep.mubr.f32.mxu0 %v100_v50  ;;  %298 = vadd.xlane.f32.xlu0 %v174_v0 }
  0xa4   :  { %300 = vadd.xlane.f32.xlu1 %v175_v1 }
  0xa6   :  { %2503 = vmatmul.mubr.f32.gmra.mrb[54].mxu0 %v101_v51 }
  0xa7   :  { %2505 = vmatprep.mubr.f32.mxu0 %v102_v54  ;;  %302 = vadd.xlane.f32.xlu0 %v176_v4 }
  0xa8   :  { %304 = vadd.xlane.f32.xlu1 %v177_v5 }
  0xaa   :  { %2506 = vmatmul.mubr.f32.gmra.mrb[56].mxu0 %v103_v55 }
  0xab   :  { %2508 = vmatprep.mubr.f32.mxu0 %v104_v58 }
  0xae   :  { %2509 = vmatmul.mubr.f32.gmra.mrb[58].mxu0 %v105_v59 }
  0xaf   :  { %2511 = vmatprep.mubr.f32.mxu0 %v106_v62 }
  0xb2   :  { %2512 = vmatmul.mubr.f32.gmra.mrb[60].mxu0 %v107_v63 }
  0xb3   :  { %2514 = vmatprep.mubr.f32.mxu0 %v108_v2 }
  0xb6   :  { %2515 = vmatmul.mubr.f32.gmra.mrb[62].mxu0 %v109_v3 }
  0xb8   :  { %v179_v7 = vpop.xlane.xlu0 %178 }
  0xb9   :  { %v183_v6 = vpop.xlane.xlu1 %182  ;;  %v698_v35 = vadd.f32 %v2897_v28, %v179_v7 }
  0xba   :  { %v700_v44 = vadd.f32 %v2897_v28, %v183_v6 }
  0xbc   :  { %v181_v9 = vpop.xlane.xlu0 %180 }
  0xbd   :  { %v185_v8 = vpop.xlane.xlu1 %184  ;;  %v699_v29 = vadd.f32 %v2897_v28, %v181_v9 }
  0xbe   :  { %v701_v37 = vadd.f32 %v2897_v28, %v185_v8 }
  0xc0   :  { %v187_v11 = vpop.xlane.xlu0 %186 }
  0xc1   :  { %v189_v10 = vpop.xlane.xlu1 %188  ;;  %v702_v52 = vadd.f32 %v2897_v28, %v187_v11 }
  0xc2   :  { %v703_v48 = vadd.f32 %v2897_v28, %v189_v10 }
  0xc4   :  { %v191_v13 = vpop.xlane.xlu0 %190 }
  0xc5   :  { %v193_v12 = vpop.xlane.xlu1 %192  ;;  %v704_v62 = vadd.f32 %v2897_v28, %v191_v13 }
  0xc6   :  { %v705_v59 = vadd.f32 %v2897_v28, %v193_v12 }
  0xc8   :  { %v2868_v15 = vpop.xlane.xlu0 %194 }
  0xc9   :  { %v2866_v14 = vpop.xlane.xlu1 %196  ;;  %v706_v10 = vadd.f32 %v2897_v28, %v2868_v15 }
  0xca   :  { %v707_v7 = vadd.f32 %v2897_v28, %v2866_v14 }
  0xcc   :  { %v2872_v17 = vpop.xlane.xlu0 %198 }
  0xcd   :  { %v2870_v16 = vpop.xlane.xlu1 %200  ;;  %v708_v15 = vadd.f32 %v2897_v28, %v2872_v17 }
  0xce   :  { %v709_v14 = vadd.f32 %v2897_v28, %v2870_v16 }
  0xd0   :  { %v2876_v19 = vpop.xlane.xlu0 %202 }
  0xd1   :  { %v2874_v18 = vpop.xlane.xlu1 %204 }
  0xd2   :  { %v711_v16 = vadd.f32 %v2897_v28, %v2874_v18 }
  0xd4   :  { %v2880_v21 = vpop.xlane.xlu0 %206 }
  0xd5   :  { %v2878_v20 = vpop.xlane.xlu1 %208 }
  0xd6   :  { %v713_v18 = vadd.f32 %v2897_v28, %v2878_v20 }
  0xd8   :  { %v2884_v23 = vpop.xlane.xlu0 %210 }
  0xd9   :  { %v2882_v22 = vpop.xlane.xlu1 %212 }
  0xda   :  { %v715_v20 = vadd.f32 %v2897_v28, %v2882_v22 }
  0xdc   :  { %v2888_v25 = vpop.xlane.xlu0 %214 }
  0xdd   :  { %v2886_v24 = vpop.xlane.xlu1 %216 }
  0xde   :  { %v717_v22 = vadd.f32 %v2897_v28, %v2886_v24 }
  0xe0   :  { %v2892_v27 = vpop.xlane.xlu0 %218 }
  0xe1   :  { %v2890_v26 = vpop.xlane.xlu1 %220 }
  0xe2   :  { %v719_v24 = vadd.f32 %v2897_v28, %v2890_v26 }
  0xe4   :  { %v2902_v34 = vpop.xlane.xlu0 %222 }
  0xe5   :  { %v2900_v31 = vpop.xlane.xlu1 %224 }
  0xe6   :  { %v721_v26 = vadd.f32 %v2897_v28, %v2900_v31 }
  0xe8   :  { %v2912_v50 = vpop.xlane.xlu0 %226 }
  0xe9   :  { %v2909_v47 = vpop.xlane.xlu1 %228 }
  0xea   :  { %v723_v31 = vadd.f32 %v2897_v28, %v2909_v47 }
  0xec   :  { %v2922_v4 = vpop.xlane.xlu0 %230 }
  0xed   :  { %v2919_v0 = vpop.xlane.xlu1 %232 }
  0xee   :  { %v725_v47 = vadd.f32 %v2897_v28, %v2919_v0 }
 0x10d   :  { %v2423_v30 = vpop.f32.mrb[0].mxu0 }
 0x10e   :  { %v763_v32 = vmul.f32 2.0, %v2423_v30  ;;  %v372_v33 = vpop.f32.mrb[1].mxu0 }
 0x10f   :  { %v762_v36 = vmul.f32 2.0, %v372_v33  ;;  %v2931_v33 = vpop.xlane.xlu1 %236 }
 0x110   :  { %v827_v38 = vsub.f32 %v699_v29, %v763_v32  ;;  %v727_v0 = vadd.f32 %v2897_v28, %v2931_v33 }
 0x111   :  { %v2426_v39 = vpop.f32.mrb[2].mxu0  ;;  %v826_v40 = vsub.f32 %v698_v35, %v762_v36  ;;  %v2935_v36 = vpop.xlane.xlu0 %234 }
 0x112   :  { %v765_v41 = vmul.f32 2.0, %v2426_v39  ;;  %v382_v42 = vpop.f32.mrb[3].mxu0  ;;  %v894_v43 = vsel %vm890_vm0, %v827_v38, inf }
 0x113   :  { %v764_v45 = vmul.f32 2.0, %v382_v42  ;;  %895 = vmin.index.xlane.f32.xlu1 %v894_v43  ;;  %v891_v46 = vsel %vm890_vm0, %v826_v40, inf  ;;  %v2945_v17 = vpop.xlane.xlu1 %240 }
 0x114   :  { %892 = vmin.index.xlane.f32.xlu0 %v891_v46  ;;  %v829_v49 = vsub.f32 %v701_v37, %v765_v41  ;;  %v710_v46 = vadd.f32 %v2897_v28, %v2876_v19  ;;  %v712_v19 = vadd.f32 %v2897_v28, %v2880_v21  ;;  %v714_v21 = vadd.f32 %v2897_v28, %v2884_v23 }
 0x115   :  { %v2429_v51 = vpop.f32.mrb[4].mxu0  ;;  %v828_v53 = vsub.f32 %v700_v44, %v764_v45  ;;  %v729_v33 = vadd.f32 %v2897_v28, %v2945_v17 }
 0x116   :  { %v767_v54 = vmul.f32 2.0, %v2429_v51  ;;  %v392_v55 = vpop.f32.mrb[5].mxu0  ;;  %v900_v56 = vsel %vm890_vm0, %v829_v49, inf }
 0x117   :  { %v766_v57 = vmul.f32 2.0, %v392_v55  ;;  %901 = vmin.index.xlane.f32.xlu1 %v900_v56  ;;  %v897_v58 = vsel %vm890_vm0, %v828_v53, inf  ;;  %v2948_v53 = vpop.xlane.xlu0 %238 }
 0x118   :  { %898 = vmin.index.xlane.f32.xlu0 %v897_v58  ;;  %v831_v60 = vsub.f32 %v703_v48, %v767_v54 }
 0x119   :  { %v2432_v61 = vpop.f32.mrb[6].mxu0  ;;  %v830_v63 = vsub.f32 %v702_v52, %v766_v57 }
 0x11a   :  { %v769_v1 = vmul.f32 2.0, %v2432_v61  ;;  %v402_v2 = vpop.f32.mrb[7].mxu0  ;;  %v906_v3 = vsel %vm890_vm0, %v831_v60, inf }
 0x11b   :  { %v768_v5 = vmul.f32 2.0, %v402_v2  ;;  %907 = vmin.index.xlane.f32.xlu1 %v906_v3  ;;  %v903_v6 = vsel %vm890_vm0, %v830_v63, inf  ;;  %v2961_v3 = vpop.xlane.xlu0 %242 }
 0x11c   :  { %904 = vmin.index.xlane.f32.xlu0 %v903_v6  ;;  %v833_v8 = vsub.f32 %v705_v59, %v769_v1  ;;  %v2957_v1 = vpop.xlane.xlu1 %244 }
 0x11d   :  { %v2435_v9 = vpop.f32.mrb[8].mxu0  ;;  %v832_v11 = vsub.f32 %v704_v62, %v768_v5  ;;  %v731_v17 = vadd.f32 %v2897_v28, %v2957_v1 }
 0x11e   :  { %v771_v12 = vmul.f32 2.0, %v2435_v9  ;;  %v412_v13 = vpop.f32.mrb[9].mxu0  ;;  %v912_v29 = vsel %vm890_vm0, %v833_v8, inf }
 0x11f   :  { %v770_v30 = vmul.f32 2.0, %v412_v13  ;;  %913 = vmin.index.xlane.f32.xlu1 %v912_v29  ;;  %v909_v32 = vsel %vm890_vm0, %v832_v11, inf  ;;  %v716_v29 = vadd.f32 %v2897_v28, %v2888_v25  ;;  %v718_v25 = vadd.f32 %v2897_v28, %v2892_v27 }
 0x120   :  { %910 = vmin.index.xlane.f32.xlu0 %v909_v32  ;;  %v835_v35 = vsub.f32 %v707_v7, %v771_v12  ;;  %v2971_v23 = vpop.xlane.xlu1 %248  ;;  %v720_v27 = vadd.f32 %v2897_v28, %v2902_v34 }
 0x121   :  { %v2438_v37 = vpop.f32.mrb[10].mxu0  ;;  %v834_v38 = vsub.f32 %v706_v10, %v770_v30  ;;  %v733_v1 = vadd.f32 %v2897_v28, %v2971_v23 }
 0x122   :  { %v773_v39 = vmul.f32 2.0, %v2438_v37  ;;  %v422_v40 = vpop.f32.mrb[11].mxu0  ;;  %v918_v41 = vsel %vm890_vm0, %v835_v35, inf  ;;  %v2974_v37 = vpop.xlane.xlu0 %246 }
 0x123   :  { %v772_v42 = vmul.f32 2.0, %v422_v40  ;;  %919 = vmin.index.xlane.f32.xlu1 %v918_v41  ;;  %v915_v43 = vsel %vm890_vm0, %v834_v38, inf }
 0x124   :  { %916 = vmin.index.xlane.f32.xlu0 %v915_v43  ;;  %v837_v44 = vsub.f32 %v709_v14, %v773_v39 }
 0x125   :  { %v2441_v45 = vpop.f32.mrb[12].mxu0  ;;  %v836_v48 = vsub.f32 %v708_v15, %v772_v42 }
 0x126   :  { %v775_v49 = vmul.f32 2.0, %v2441_v45  ;;  %v432_v51 = vpop.f32.mrb[13].mxu0  ;;  %v924_v52 = vsel %vm890_vm0, %v837_v44, inf }
 0x127   :  { %v774_v54 = vmul.f32 2.0, %v432_v51  ;;  %925 = vmin.index.xlane.f32.xlu1 %v924_v52  ;;  %v921_v55 = vsel %vm890_vm0, %v836_v48, inf }
 0x128   :  { %922 = vmin.index.xlane.f32.xlu0 %v921_v55  ;;  %v839_v56 = vsub.f32 %v711_v16, %v775_v49  ;;  %v2987_v49 = vpop.xlane.xlu0 %250 }
 0x129   :  { %v2444_v57 = vpop.f32.mrb[14].mxu0  ;;  %v838_v58 = vsub.f32 %v710_v46, %v774_v54  ;;  %v2983_v46 = vpop.xlane.xlu1 %252 }
 0x12a   :  { %v777_v59 = vmul.f32 2.0, %v2444_v57  ;;  %v442_v60 = vpop.f32.mrb[15].mxu0  ;;  %v930_v61 = vsel %vm890_vm0, %v839_v56, inf  ;;  %v735_v23 = vadd.f32 %v2897_v28, %v2983_v46 }
 0x12b   :  { %v776_v62 = vmul.f32 2.0, %v442_v60  ;;  %931 = vmin.index.xlane.f32.xlu1 %v930_v61  ;;  %v927_v63 = vsel %vm890_vm0, %v838_v58, inf }
 0x12c   :  { %928 = vmin.index.xlane.f32.xlu0 %v927_v63  ;;  %v841_v2 = vsub.f32 %v713_v18, %v777_v59  ;;  %v722_v59 = vadd.f32 %v2897_v28, %v2912_v50  ;;  %v724_v50 = vadd.f32 %v2897_v28, %v2922_v4  ;;  %v726_v4 = vadd.f32 %v2897_v28, %v2935_v36 }
 0x12d   :  { %v2447_v5 = vpop.f32.mrb[16].mxu0  ;;  %v840_v6 = vsub.f32 %v712_v19, %v776_v62  ;;  %v2997_v34 = vpop.xlane.xlu1 %256 }
 0x12e   :  { %v779_v7 = vmul.f32 2.0, %v2447_v5  ;;  %v452_v8 = vpop.f32.mrb[17].mxu0  ;;  %v936_v9 = vsel %vm890_vm0, %v841_v2, inf  ;;  %v737_v46 = vadd.f32 %v2897_v28, %v2997_v34 }
 0x12f   :  { %v778_v10 = vmul.f32 2.0, %v452_v8  ;;  %937 = vmin.index.xlane.f32.xlu1 %v936_v9  ;;  %v933_v11 = vsel %vm890_vm0, %v840_v6, inf }
 0x130   :  { %934 = vmin.index.xlane.f32.xlu0 %v933_v11  ;;  %v843_v12 = vsub.f32 %v715_v20, %v779_v7  ;;  %v3000_v20 = vpop.xlane.xlu0 %254 }
 0x131   :  { %v2450_v13 = vpop.f32.mrb[18].mxu0  ;;  %v842_v30 = vsub.f32 %v714_v21, %v778_v10 }
 0x132   :  { %v781_v32 = vmul.f32 2.0, %v2450_v13  ;;  %v462_v14 = vpop.f32.mrb[19].mxu0  ;;  %v942_v35 = vsel %vm890_vm0, %v843_v12, inf  ;;  %v3009_v12 = vpop.xlane.xlu1 %260 }
 0x133   :  { %v780_v15 = vmul.f32 2.0, %v462_v14  ;;  %943 = vmin.index.xlane.f32.xlu1 %v942_v35  ;;  %v939_v38 = vsel %vm890_vm0, %v842_v30, inf }
 0x134   :  { %940 = vmin.index.xlane.f32.xlu0 %v939_v38  ;;  %v845_v39 = vsub.f32 %v717_v22, %v781_v32 }
 0x135   :  { %v2453_v40 = vpop.f32.mrb[20].mxu0  ;;  %v844_v41 = vsub.f32 %v716_v29, %v780_v15  ;;  %v3013_v29 = vpop.xlane.xlu0 %258 }
 0x136   :  { %v783_v42 = vmul.f32 2.0, %v2453_v40  ;;  %v472_v43 = vpop.f32.mrb[21].mxu0  ;;  %v948_v16 = vsel %vm890_vm0, %v845_v39, inf  ;;  %v3023_v36 = vpop.xlane.xlu1 %264 }
 0x137   :  { %v782_v44 = vmul.f32 2.0, %v472_v43  ;;  %949 = vmin.index.xlane.f32.xlu1 %v948_v16  ;;  %v945_v45 = vsel %vm890_vm0, %v844_v41, inf }
 0x138   :  { %946 = vmin.index.xlane.f32.xlu0 %v945_v45  ;;  %v847_v48 = vsub.f32 %v719_v24, %v783_v42 }
 0x139   :  { %v2456_v51 = vpop.f32.mrb[22].mxu0  ;;  %v846_v52 = vsub.f32 %v718_v25, %v782_v44  ;;  %v728_v25 = vadd.f32 %v2897_v28, %v2948_v53  ;;  %v3026_v44 = vpop.xlane.xlu0 %262  ;;  %v730_v53 = vadd.f32 %v2897_v28, %v2961_v3  ;;  %v732_v3 = vadd.f32 %v2897_v28, %v2974_v37 }
 0x13a   :  { %v785_v54 = vmul.f32 2.0, %v2456_v51  ;;  %v482_v55 = vpop.f32.mrb[23].mxu0  ;;  %v954_v18 = vsel %vm890_vm0, %v847_v48, inf }
 0x13b   :  { %v784_v56 = vmul.f32 2.0, %v482_v55  ;;  %955 = vmin.index.xlane.f32.xlu1 %v954_v18  ;;  %v951_v57 = vsel %vm890_vm0, %v846_v52, inf }
 0x13c   :  { %952 = vmin.index.xlane.f32.xlu0 %v951_v57  ;;  %v849_v19 = vsub.f32 %v721_v26, %v785_v54  ;;  %v3035_v57 = vpop.xlane.xlu1 %268 }
 0x13d   :  { %v2459_v58 = vpop.f32.mrb[24].mxu0  ;;  %v848_v60 = vsub.f32 %v720_v27, %v784_v56 }
 0x13e   :  { %v787_v61 = vmul.f32 2.0, %v2459_v58  ;;  %v492_v62 = vpop.f32.mrb[25].mxu0  ;;  %v960_v63 = vsel %vm890_vm0, %v849_v19, inf  ;;  %v3039_v19 = vpop.xlane.xlu0 %266 }
 0x13f   :  { %v786_v2 = vmul.f32 2.0, %v492_v62  ;;  %961 = vmin.index.xlane.f32.xlu1 %v960_v63  ;;  %v957_v5 = vsel %vm890_vm0, %v848_v60, inf }
 0x140   :  { %958 = vmin.index.xlane.f32.xlu0 %v957_v5  ;;  %v851_v21 = vsub.f32 %v723_v31, %v787_v61  ;;  %v3049_v37 = vpop.xlane.xlu1 %272 }
 0x141   :  { %v2462_v6 = vpop.f32.mrb[26].mxu0  ;;  %v850_v7 = vsub.f32 %v722_v59, %v786_v2 }
 0x142   :  { %v789_v8 = vmul.f32 2.0, %v2462_v6  ;;  %v502_v9 = vpop.f32.mrb[27].mxu0  ;;  %v966_v10 = vsel %vm890_vm0, %v851_v21, inf  ;;  %v734_v6 = vadd.f32 %v2897_v28, %v2987_v49  ;;  %v736_v49 = vadd.f32 %v2897_v28, %v3000_v20 }
 0x143   :  { %v788_v11 = vmul.f32 2.0, %v502_v9  ;;  %967 = vmin.index.xlane.f32.xlu1 %v966_v10  ;;  %v963_v22 = vsel %vm890_vm0, %v850_v7, inf  ;;  %v3052_v9 = vpop.xlane.xlu0 %270  ;;  %v738_v20 = vadd.f32 %v2897_v28, %v3013_v29 }
 0x144   :  { %964 = vmin.index.xlane.f32.xlu0 %v963_v22  ;;  %v853_v13 = vsub.f32 %v725_v47, %v789_v8 }
 0x145   :  { %v2465_v30 = vpop.f32.mrb[28].mxu0  ;;  %v852_v32 = vsub.f32 %v724_v50, %v788_v11 }
 0x146   :  { %v791_v14 = vmul.f32 2.0, %v2465_v30  ;;  %v512_v35 = vpop.f32.mrb[29].mxu0  ;;  %v972_v15 = vsel %vm890_vm0, %v853_v13, inf }
 0x147   :  { %v790_v38 = vmul.f32 2.0, %v512_v35  ;;  %973 = vmin.index.xlane.f32.xlu1 %v972_v15  ;;  %v969_v24 = vsel %vm890_vm0, %v852_v32, inf  ;;  %v277_v15 = vpop.xlane.xlu1 %276  ;;  %v275_v34 = vpop.xlane.xlu0 %274 }
 0x148   :  { %970 = vmin.index.xlane.f32.xlu0 %v969_v24  ;;  %v855_v39 = vsub.f32 %v727_v0, %v791_v14  ;;  %v739_v24 = vadd.f32 %v2897_v28, %v3009_v12 }
 0x149   :  { %v2468_v40 = vpop.f32.mrb[30].mxu0  ;;  %v854_v41 = vsub.f32 %v726_v4, %v790_v38 }
 0x14a   :  { %v793_v42 = vmul.f32 2.0, %v2468_v40  ;;  %v522_v43 = vpop.f32.mrb[31].mxu0  ;;  %v978_v16 = vsel %vm890_vm0, %v855_v39, inf }
 0x14b   :  { %v792_v45 = vmul.f32 2.0, %v522_v43  ;;  %979 = vmin.index.xlane.f32.xlu1 %v978_v16  ;;  %v975_v26 = vsel %vm890_vm0, %v854_v41, inf }
 0x14c   :  { %976 = vmin.index.xlane.f32.xlu0 %v975_v26  ;;  %v857_v48 = vsub.f32 %v729_v33, %v793_v42 }
 0x14d   :  { %v2471_v51 = vpop.f32.mrb[32].mxu0  ;;  %v856_v27 = vsub.f32 %v728_v25, %v792_v45  ;;  %v741_v45 = vadd.f32 %v2897_v28, %v3023_v36  ;;  %v743_v36 = vadd.f32 %v2897_v28, %v3035_v57 }
 0x14e   :  { %v795_v52 = vmul.f32 2.0, %v2471_v51  ;;  %v532_v54 = vpop.f32.mrb[33].mxu0  ;;  %v984_v55 = vsel %vm890_vm0, %v857_v48, inf  ;;  %v281_v48 = vpop.xlane.xlu1 %280 }
 0x14f   :  { %v794_v18 = vmul.f32 2.0, %v532_v54  ;;  %985 = vmin.index.xlane.f32.xlu1 %v984_v55  ;;  %v981_v56 = vsel %vm890_vm0, %v856_v27, inf  ;;  %v279_v27 = vpop.xlane.xlu0 %278 }
 0x150   :  { %982 = vmin.index.xlane.f32.xlu0 %v981_v56  ;;  %v859_v31 = vsub.f32 %v731_v17, %v795_v52  ;;  %v740_v17 = vadd.f32 %v2897_v28, %v3026_v44  ;;  %v742_v44 = vadd.f32 %v2897_v28, %v3039_v19  ;;  %v744_v19 = vadd.f32 %v2897_v28, %v3052_v9 }
 0x151   :  { %v2474_v58 = vpop.f32.mrb[34].mxu0  ;;  %v858_v59 = vsub.f32 %v730_v53, %v794_v18 }
 0x152   :  { %v797_v60 = vmul.f32 2.0, %v2474_v58  ;;  %v542_v61 = vpop.f32.mrb[35].mxu0  ;;  %v990_v62 = vsel %vm890_vm0, %v859_v31, inf }
 0x153   :  { %v796_v63 = vmul.f32 2.0, %v542_v61  ;;  %991 = vmin.index.xlane.f32.xlu1 %v990_v62  ;;  %v987_v2 = vsel %vm890_vm0, %v858_v59, inf  ;;  %v745_v62 = vadd.f32 %v2897_v28, %v3049_v37  ;;  %v283_v57 = vpop.xlane.xlu0 %282 }
 0x154   :  { %v861_v5 = vsub.f32 %v733_v1, %v797_v60  ;;  %988 = vmin.index.xlane.f32.xlu0 %v987_v2  ;;  %v285_v60 = vpop.xlane.xlu1 %284 }
 0x155   :  { %v860_v47 = vsub.f32 %v732_v3, %v796_v63  ;;  %v2477_v21 = vpop.f32.mrb[36].mxu0 }
 0x156   :  { %v799_v50 = vmul.f32 2.0, %v2477_v21  ;;  %v552_v7 = vpop.f32.mrb[37].mxu0  ;;  %v996_v8 = vsel %vm890_vm0, %v861_v5, inf }
 0x157   :  { %v798_v10 = vmul.f32 2.0, %v552_v7  ;;  %997 = vmin.index.xlane.f32.xlu1 %v996_v8  ;;  %v993_v11 = vsel %vm890_vm0, %v860_v47, inf  ;;  %v747_v7 = vadd.f32 %v2897_v28, %v277_v15 }
 0x158   :  { %v863_v22 = vsub.f32 %v735_v23, %v799_v50  ;;  %994 = vmin.index.xlane.f32.xlu0 %v993_v11  ;;  %v289_v11 = vpop.xlane.xlu1 %288 }
 0x159   :  { %v862_v0 = vsub.f32 %v734_v6, %v798_v10  ;;  %v2480_v13 = vpop.f32.mrb[38].mxu0  ;;  %v746_v10 = vadd.f32 %v2897_v28, %v275_v34 }
 0x15a   :  { %v801_v30 = vmul.f32 2.0, %v2480_v13  ;;  %v562_v4 = vpop.f32.mrb[39].mxu0  ;;  %v1002_v32 = vsel %vm890_vm0, %v863_v22, inf }
 0x15b   :  { %v800_v14 = vmul.f32 2.0, %v562_v4  ;;  %1003 = vmin.index.xlane.f32.xlu1 %v1002_v32  ;;  %v999_v35 = vsel %vm890_vm0, %v862_v0, inf  ;;  %v287_v0 = vpop.xlane.xlu0 %286  ;;  %v749_v4 = vadd.f32 %v2897_v28, %v281_v48 }
 0x15c   :  { %v865_v38 = vsub.f32 %v737_v46, %v801_v30  ;;  %1000 = vmin.index.xlane.f32.xlu0 %v999_v35  ;;  %v748_v35 = vadd.f32 %v2897_v28, %v279_v27  ;;  %v752_v27 = vadd.f32 %v2897_v28, %v287_v0 }
 0x15d   :  { %v864_v33 = vsub.f32 %v736_v49, %v800_v14  ;;  %v2483_v39 = vpop.f32.mrb[40].mxu0 }
 0x15e   :  { %v803_v40 = vmul.f32 2.0, %v2483_v39  ;;  %v572_v25 = vpop.f32.mrb[41].mxu0  ;;  %v1008_v41 = vsel %vm890_vm0, %v865_v38, inf  ;;  %v293_v39 = vpop.xlane.xlu1 %292 }
 0x15f   :  { %v802_v42 = vmul.f32 2.0, %v572_v25  ;;  %1009 = vmin.index.xlane.f32.xlu1 %v1008_v41  ;;  %v1005_v43 = vsel %vm890_vm0, %v864_v33, inf  ;;  %v291_v25 = vpop.xlane.xlu0 %290 }
 0x160   :  { %v867_v16 = vsub.f32 %v739_v24, %v803_v40  ;;  %1006 = vmin.index.xlane.f32.xlu0 %v1005_v43  ;;  %v751_v40 = vadd.f32 %v2897_v28, %v285_v60  ;;  %v750_v43 = vadd.f32 %v2897_v28, %v283_v57 }
 0x161   :  { %v866_v12 = vsub.f32 %v738_v20, %v802_v42  ;;  %v2486_v26 = vpop.f32.mrb[42].mxu0 }
 0x162   :  { %v805_v29 = vmul.f32 2.0, %v2486_v26  ;;  %v582_v51 = vpop.f32.mrb[43].mxu0  ;;  %v1014_v53 = vsel %vm890_vm0, %v867_v16, inf }
 0x163   :  { %v804_v52 = vmul.f32 2.0, %v582_v51  ;;  %1015 = vmin.index.xlane.f32.xlu1 %v1014_v53  ;;  %v1011_v54 = vsel %vm890_vm0, %v866_v12, inf }
 0x164   :  { %v869_v55 = vsub.f32 %v741_v45, %v805_v29  ;;  %1012 = vmin.index.xlane.f32.xlu0 %v1011_v54  ;;  %v753_v29 = vadd.f32 %v2897_v28, %v289_v11 }
 0x165   :  { %v868_v18 = vsub.f32 %v740_v17, %v804_v52  ;;  %v2489_v56 = vpop.f32.mrb[44].mxu0  ;;  %v297_v52 = vpop.xlane.xlu1 %296 }
 0x166   :  { %v807_v1 = vmul.f32 2.0, %v2489_v56  ;;  %v592_v31 = vpop.f32.mrb[45].mxu0  ;;  %v1020_v58 = vsel %vm890_vm0, %v869_v55, inf }
 0x167   :  { %v806_v3 = vmul.f32 2.0, %v592_v31  ;;  %1021 = vmin.index.xlane.f32.xlu1 %v1020_v58  ;;  %v1017_v59 = vsel %vm890_vm0, %v868_v18, inf  ;;  %v295_v18 = vpop.xlane.xlu0 %294  ;;  %v755_v31 = vadd.f32 %v2897_v28, %v293_v39 }
 0x168   :  { %v871_v61 = vsub.f32 %v743_v36, %v807_v1  ;;  %1018 = vmin.index.xlane.f32.xlu0 %v1017_v59  ;;  %v754_v59 = vadd.f32 %v2897_v28, %v291_v25 }
 0x169   :  { %v870_v63 = vsub.f32 %v742_v44, %v806_v3  ;;  %v2492_v2 = vpop.f32.mrb[46].mxu0 }
 0x16a   :  { %v809_v5 = vmul.f32 2.0, %v2492_v2  ;;  %v602_v23 = vpop.f32.mrb[47].mxu0  ;;  %v1026_v47 = vsel %vm890_vm0, %v871_v61, inf  ;;  %v301_v2 = vpop.xlane.xlu1 %300 }
 0x16b   :  { %v808_v21 = vmul.f32 2.0, %v602_v23  ;;  %1027 = vmin.index.xlane.f32.xlu1 %v1026_v47  ;;  %v1023_v6 = vsel %vm890_vm0, %v870_v63, inf  ;;  %v299_v23 = vpop.xlane.xlu0 %298 }
 0x16c   :  { %v873_v50 = vsub.f32 %v745_v62, %v809_v5  ;;  %1024 = vmin.index.xlane.f32.xlu0 %v1023_v6  ;;  %v757_v5 = vadd.f32 %v2897_v28, %v297_v52  ;;  %v756_v6 = vadd.f32 %v2897_v28, %v295_v18  ;;  %v758_v0 = vadd.f32 %v2897_v28, %v299_v23 }
 0x16d   :  { %v872_v8 = vsub.f32 %v744_v19, %v808_v21  ;;  %v2495_v37 = vpop.f32.mrb[48].mxu0 }
 0x16e   :  { %v811_v22 = vmul.f32 2.0, %v2495_v37  ;;  %v612_v46 = vpop.f32.mrb[49].mxu0  ;;  %v1032_v9 = vsel %vm890_vm0, %v873_v50, inf }
 0x16f   :  { %v810_v13 = vmul.f32 2.0, %v612_v46  ;;  %1033 = vmin.index.xlane.f32.xlu1 %v1032_v9  ;;  %v1029_v49 = vsel %vm890_vm0, %v872_v8, inf }
 0x170   :  { %v875_v30 = vsub.f32 %v747_v7, %v811_v22  ;;  %1030 = vmin.index.xlane.f32.xlu0 %v1029_v49  ;;  %v759_v22 = vadd.f32 %v2897_v28, %v301_v2 }
 0x171   :  { %v874_v32 = vsub.f32 %v746_v10, %v810_v13  ;;  %v2498_v14 = vpop.f32.mrb[50].mxu0  ;;  %v305_v13 = vpop.xlane.xlu1 %304 }
 0x172   :  { %v813_v15 = vmul.f32 2.0, %v2498_v14  ;;  %v622_v38 = vpop.f32.mrb[51].mxu0  ;;  %v1038_v24 = vsel %vm890_vm0, %v875_v30, inf }
 0x173   :  { %v812_v34 = vmul.f32 2.0, %v622_v38  ;;  %1039 = vmin.index.xlane.f32.xlu1 %v1038_v24  ;;  %v1035_v33 = vsel %vm890_vm0, %v874_v32, inf  ;;  %v303_v32 = vpop.xlane.xlu0 %302  ;;  %v761_v38 = vadd.f32 %v2897_v28, %v305_v13 }
 0x174   :  { %v877_v20 = vsub.f32 %v749_v4, %v813_v15  ;;  %1036 = vmin.index.xlane.f32.xlu0 %v1035_v33  ;;  %v760_v33 = vadd.f32 %v2897_v28, %v303_v32 }
 0x175   :  { %v876_v41 = vsub.f32 %v748_v35, %v812_v34  ;;  %v2501_v42 = vpop.f32.mrb[52].mxu0 }
 0x176   :  { %v815_v16 = vmul.f32 2.0, %v2501_v42  ;;  %v632_v45 = vpop.f32.mrb[53].mxu0  ;;  %v1044_v12 = vsel %vm890_vm0, %v877_v20, inf }
 0x177   :  { %v814_v26 = vmul.f32 2.0, %v632_v45  ;;  %1045 = vmin.index.xlane.f32.xlu1 %v1044_v12  ;;  %v1041_v17 = vsel %vm890_vm0, %v876_v41, inf  ;;  %v1083_v12 = vlaneseq }
 0x178   :  { %v879_v48 = vsub.f32 %v751_v40, %v815_v16  ;;  %1042 = vmin.index.xlane.f32.xlu0 %v1041_v17 }
 0x179   :  { %v878_v51 = vsub.f32 %v750_v43, %v814_v26  ;;  %v2504_v53 = vpop.f32.mrb[54].mxu0  ;;  %v3119_v26 = vand.u32 127, %v1083_v12 }
 0x17a   :  { %v817_v54 = vmul.f32 2.0, %v2504_v53  ;;  %v642_v55 = vpop.f32.mrb[55].mxu0  ;;  %v1050_v36 = vsel %vm890_vm0, %v879_v48, inf  ;;  %v2808_v48 = vmov 0.0  }
 0x17b   :  { %v816_v56 = vmul.f32 2.0, %v642_v55  ;;  %1051 = vmin.index.xlane.f32.xlu1 %v1050_v36  ;;  %v1047_v44 = vsel %vm890_vm0, %v878_v51, inf }
 0x17c   :  { %v881_v1 = vsub.f32 %v753_v29, %v817_v54  ;;  %1048 = vmin.index.xlane.f32.xlu0 %v1047_v44 }
 0x17d   :  { %v880_v58 = vsub.f32 %v752_v27, %v816_v56  ;;  %v2507_v3 = vpop.f32.mrb[56].mxu0 }
 0x17e   :  { %v819_v60 = vmul.f32 2.0, %v2507_v3  ;;  %v652_v61 = vpop.f32.mrb[57].mxu0  ;;  %v1056_v62 = vsel %vm890_vm0, %v881_v1, inf }
 0x17f   :  { %v818_v57 = vmul.f32 2.0, %v652_v61  ;;  %1057 = vmin.index.xlane.f32.xlu1 %v1056_v62  ;;  %v1053_v63 = vsel %vm890_vm0, %v880_v58, inf }
 0x180   :  { %v883_v19 = vsub.f32 %v755_v31, %v819_v60  ;;  %1054 = vmin.index.xlane.f32.xlu0 %v1053_v63 }
 0x181   :  { %v882_v47 = vsub.f32 %v754_v59, %v818_v57  ;;  %v2510_v21 = vpop.f32.mrb[58].mxu0 }
 0x182   :  { %v821_v50 = vmul.f32 2.0, %v2510_v21  ;;  %v662_v7 = vpop.f32.mrb[59].mxu0  ;;  %v1062_v8 = vsel %vm890_vm0, %v883_v19, inf }
 0x183   :  { %v820_v37 = vmul.f32 2.0, %v662_v7  ;;  %1063 = vmin.index.xlane.f32.xlu1 %v1062_v8  ;;  %v1059_v10 = vsel %vm890_vm0, %v882_v47, inf }
 0x184   :  { %v885_v11 = vsub.f32 %v757_v5, %v821_v50  ;;  %1060 = vmin.index.xlane.f32.xlu0 %v1059_v10 }
 0x185   :  { %v884_v46 = vsub.f32 %v756_v6, %v820_v37  ;;  %v2513_v9 = vpop.f32.mrb[60].mxu0 }
 0x186   :  { %v823_v49 = vmul.f32 2.0, %v2513_v9  ;;  %v672_v30 = vpop.f32.mrb[61].mxu0  ;;  %v1068_v4 = vsel %vm890_vm0, %v885_v11, inf }
 0x187   :  { %v822_v14 = vmul.f32 2.0, %v672_v30  ;;  %1069 = vmin.index.xlane.f32.xlu1 %v1068_v4  ;;  %v1065_v35 = vsel %vm890_vm0, %v884_v46, inf }
 0x188   :  { %v887_v15 = vsub.f32 %v759_v22, %v823_v49  ;;  %1066 = vmin.index.xlane.f32.xlu0 %v1065_v35 }
 0x189   :  { %v886_v24 = vsub.f32 %v758_v0, %v822_v14  ;;  %v2516_v34 = vpop.f32.mrb[62].mxu0 }
 0x18a   :  { %v825_v39 = vmul.f32 2.0, %v2516_v34  ;;  %v682_v20 = vpop.f32.mrb[63].mxu0  ;;  %v1074_v40 = vsel %vm890_vm0, %v887_v15, inf }
 0x18b   :  { %v824_v25 = vmul.f32 2.0, %v682_v20  ;;  %1075 = vmin.index.xlane.f32.xlu1 %v1074_v40  ;;  %v1071_v41 = vsel %vm890_vm0, %v886_v24, inf }
 0x18c   :  { %v889_v42 = vsub.f32 %v761_v38, %v825_v39  ;;  %1072 = vmin.index.xlane.f32.xlu0 %v1071_v41 }
 0x18d   :  { %v888_v43 = vsub.f32 %v760_v33, %v824_v25 }
 0x18e   :  { %v1080_v16 = vsel %vm890_vm0, %v889_v42, inf }
 0x18f   :  { %1081 = vmin.index.xlane.f32.xlu1 %v1080_v16  ;;  %v1077_v45 = vsel %vm890_vm0, %v888_v43, inf }
 0x190   :  { %1078 = vmin.index.xlane.f32.xlu0 %v1077_v45 }
 0x1a0   :  { %v896_v28 = vpop.xlane.xlu1 %895 }
 0x1a1   :  { %vm1086_vm1 = vcmp.eq.s32.totalorder %v896_v28, %v3119_v26  ;;  %v893_v17 = vpop.xlane.xlu0 %892 }
 0x1a2   :  { %vm1085_vm2 = vcmp.eq.s32.totalorder %v893_v17, %v3119_v26  ;;  %v2150_v51 = vsel %vm1086_vm1, 1.0, %v2808_v48 }
 0x1a3   :  { %v2149_v29 = vsel %vm1085_vm2, 1.0, %v2808_v48 }
 0x1a4   :  { %v902_v53 = vpop.xlane.xlu1 %901  ;;  %2525 = vmatprep.mubr.msk.f32.mxu1 %vm890_vm0, %v2149_v29 }
 0x1a5   :  { %vm1088_vm3 = vcmp.eq.s32.totalorder %v902_v53, %v3119_v26  ;;  %2526 = vmatmul.mubr.msk.f32.vlgmr.msra.gmra.mrb[0].mxu1 %vm890_vm0, %v2150_v51  ;;  %v899_v27 = vpop.xlane.xlu0 %898 }
 0x1a6   :  { %vm1087_vm4 = vcmp.eq.s32.totalorder %v899_v27, %v3119_v26  ;;  %v2152_v54 = vsel %vm1088_vm3, 1.0, %v2808_v48 }
 0x1a7   :  { %v2151_v52 = vsel %vm1087_vm4, 1.0, %v2808_v48 }
 0x1a8   :  { %v908_v55 = vpop.xlane.xlu1 %907  ;;  %2528 = vmatprep.mubr.msk.f32.mxu1 %vm890_vm0, %v2151_v52 }
 0x1a9   :  { %vm1090_vm5 = vcmp.eq.s32.totalorder %v908_v55, %v3119_v26  ;;  %2529 = vmatmul.mubr.msk.f32.gmra.mrb[2].mxu1 %vm890_vm0, %v2152_v54  ;;  %v905_v36 = vpop.xlane.xlu0 %904 }
 0x1aa   :  { %vm1089_vm6 = vcmp.eq.s32.totalorder %v905_v36, %v3119_v26  ;;  %v2154_v56 = vsel %vm1090_vm5, 1.0, %v2808_v48 }
 0x1ab   :  { %v2153_v18 = vsel %vm1089_vm6, 1.0, %v2808_v48 }
 0x1ac   :  { %v914_v44 = vpop.xlane.xlu1 %913  ;;  %2531 = vmatprep.mubr.msk.f32.mxu1 %vm890_vm0, %v2153_v18 }
 0x1ad   :  { %vm1092_vm7 = vcmp.eq.s32.totalorder %v914_v44, %v3119_v26  ;;  %2532 = vmatmul.mubr.msk.f32.gmra.mrb[4].mxu1 %vm890_vm0, %v2154_v56  ;;  %v911_v1 = vpop.xlane.xlu0 %910 }
 0x1ae   :  { %vm1091_vm8 = vcmp.eq.s32.totalorder %v911_v1, %v3119_v26  ;;  %v2156_v58 = vsel %vm1092_vm7, 1.0, %v2808_v48 }
 0x1af   :  { %v2155_v31 = vsel %vm1091_vm8, 1.0, %v2808_v48 }
 0x1b0   :  { %v920_v3 = vpop.xlane.xlu1 %919  ;;  %2534 = vmatprep.mubr.msk.f32.mxu1 %vm890_vm0, %v2155_v31 }
 0x1b1   :  { %vm1094_vm9 = vcmp.eq.s32.totalorder %v920_v3, %v3119_v26  ;;  %2535 = vmatmul.mubr.msk.f32.gmra.mrb[6].mxu1 %vm890_vm0, %v2156_v58  ;;  %v917_v59 = vpop.xlane.xlu0 %916 }
 0x1b2   :  { %vm1093_vm10 = vcmp.eq.s32.totalorder %v917_v59, %v3119_v26  ;;  %v2158_v61 = vsel %vm1094_vm9, 1.0, %v2808_v48 }
 0x1b3   :  { %v2157_v60 = vsel %vm1093_vm10, 1.0, %v2808_v48 }
 0x1b4   :  { %v926_v62 = vpop.xlane.xlu1 %925  ;;  %2537 = vmatprep.mubr.msk.f32.mxu1 %vm890_vm0, %v2157_v60 }
 0x1b5   :  { %vm1096_vm11 = vcmp.eq.s32.totalorder %v926_v62, %v3119_v26  ;;  %2538 = vmatmul.mubr.msk.f32.gmra.mrb[8].mxu1 %vm890_vm0, %v2158_v61  ;;  %v923_v57 = vpop.xlane.xlu0 %922 }
 0x1b6   :  { %vm1095_vm12 = vcmp.eq.s32.totalorder %v923_v57, %v3119_v26  ;;  %v2160_v2 = vsel %vm1096_vm11, 1.0, %v2808_v48 }
 0x1b7   :  { %v2159_v63 = vsel %vm1095_vm12, 1.0, %v2808_v48 }
 0x1b8   :  { %v932_v19 = vpop.xlane.xlu1 %931  ;;  %2540 = vmatprep.mubr.msk.f32.mxu1 %vm890_vm0, %v2159_v63 }
 0x1b9   :  { %vm1098_vm13 = vcmp.eq.s32.totalorder %v932_v19, %v3119_v26  ;;  %2541 = vmatmul.mubr.msk.f32.gmra.mrb[10].mxu1 %vm890_vm0, %v2160_v2  ;;  %v929_v5 = vpop.xlane.xlu0 %928 }
 0x1ba   :  { %vm1097_vm14 = vcmp.eq.s32.totalorder %v929_v5, %v3119_v26  ;;  %v2162_v47 = vsel %vm1098_vm13, 1.0, %v2808_v48 }
 0x1bb   :  { %v2161_v23 = vsel %vm1097_vm14, 1.0, %v2808_v48 }
 0x1bc   :  { %v938_v21 = vpop.xlane.xlu1 %937  ;;  %2543 = vmatprep.mubr.msk.f32.mxu1 %vm890_vm0, %v2161_v23 }
 0x1bd   :  { %vm1100_vm15 = vcmp.eq.s32.totalorder %v938_v21, %v3119_v26  ;;  %2544 = vmatmul.mubr.msk.f32.gmra.mrb[12].mxu1 %vm890_vm0, %v2162_v47  ;;  %v935_v6 = vpop.xlane.xlu0 %934 }
 0x1be   :  { %vm1099_vm1 = vcmp.eq.s32.totalorder %v935_v6, %v3119_v26  ;;  %v2164_v7 = vsel %vm1100_vm15, 1.0, %v2808_v48 }
 0x1bf   :  { %v2163_v50 = vsel %vm1099_vm1, 1.0, %v2808_v48 }
 0x1c0   :  { %v944_v8 = vpop.xlane.xlu1 %943  ;;  %2546 = vmatprep.mubr.msk.f32.mxu1 %vm890_vm0, %v2163_v50 }
 0x1c1   :  { %vm1102_vm2 = vcmp.eq.s32.totalorder %v944_v8, %v3119_v26  ;;  %2547 = vmatmul.mubr.msk.f32.gmra.mrb[14].mxu1 %vm890_vm0, %v2164_v7  ;;  %v941_v37 = vpop.xlane.xlu0 %940 }
 0x1c2   :  { %vm1101_vm3 = vcmp.eq.s32.totalorder %v941_v37, %v3119_v26  ;;  %v2166_v11 = vsel %vm1102_vm2, 1.0, %v2808_v48 }
 0x1c3   :  { %v2165_v10 = vsel %vm1101_vm3, 1.0, %v2808_v48 }
 0x1c4   :  { %v950_v22 = vpop.xlane.xlu1 %949  ;;  %2549 = vmatprep.mubr.msk.f32.mxu1 %vm890_vm0, %v2165_v10 }
 0x1c5   :  { %vm1104_vm4 = vcmp.eq.s32.totalorder %v950_v22, %v3119_v26  ;;  %2550 = vmatmul.mubr.msk.f32.gmra.mrb[16].mxu1 %vm890_vm0, %v2166_v11  ;;  %v947_v46 = vpop.xlane.xlu0 %946 }
 0x1c6   :  { %vm1103_vm5 = vcmp.eq.s32.totalorder %v947_v46, %v3119_v26  ;;  %v2168_v0 = vsel %vm1104_vm4, 1.0, %v2808_v48 }
 0x1c7   :  { %v2167_v9 = vsel %vm1103_vm5, 1.0, %v2808_v48 }
 0x1c8   :  { %v956_v13 = vpop.xlane.xlu1 %955  ;;  %2552 = vmatprep.mubr.msk.f32.mxu1 %vm890_vm0, %v2167_v9 }
 0x1c9   :  { %vm1106_vm6 = vcmp.eq.s32.totalorder %v956_v13, %v3119_v26  ;;  %2553 = vmatmul.mubr.msk.f32.gmra.mrb[18].mxu1 %vm890_vm0, %v2168_v0  ;;  %v953_v49 = vpop.xlane.xlu0 %952 }
 0x1ca   :  { %vm1105_vm7 = vcmp.eq.s32.totalorder %v953_v49, %v3119_v26  ;;  %v2170_v4 = vsel %vm1106_vm6, 1.0, %v2808_v48 }
 0x1cb   :  { %v2169_v30 = vsel %vm1105_vm7, 1.0, %v2808_v48 }
 0x1cc   :  { %v962_v32 = vpop.xlane.xlu1 %961  ;;  %2555 = vmatprep.mubr.msk.f32.mxu1 %vm890_vm0, %v2169_v30 }
 0x1cd   :  { %vm1108_vm8 = vcmp.eq.s32.totalorder %v962_v32, %v3119_v26  ;;  %2556 = vmatmul.mubr.msk.f32.gmra.mrb[20].mxu1 %vm890_vm0, %v2170_v4  ;;  %v959_v14 = vpop.xlane.xlu0 %958 }
 0x1ce   :  { %vm1107_vm9 = vcmp.eq.s32.totalorder %v959_v14, %v3119_v26  ;;  %v2172_v15 = vsel %vm1108_vm8, 1.0, %v2808_v48 }
 0x1cf   :  { %v2171_v35 = vsel %vm1107_vm9, 1.0, %v2808_v48 }
 0x1d0   :  { %v968_v38 = vpop.xlane.xlu1 %967  ;;  %2558 = vmatprep.mubr.msk.f32.mxu1 %vm890_vm0, %v2171_v35 }
 0x1d1   :  { %vm1110_vm10 = vcmp.eq.s32.totalorder %v968_v38, %v3119_v26  ;;  %2559 = vmatmul.mubr.msk.f32.gmra.mrb[22].mxu1 %vm890_vm0, %v2172_v15  ;;  %v965_v24 = vpop.xlane.xlu0 %964 }
 0x1d2   :  { %vm1109_vm11 = vcmp.eq.s32.totalorder %v965_v24, %v3119_v26  ;;  %v2174_v33 = vsel %vm1110_vm10, 1.0, %v2808_v48 }
 0x1d3   :  { %v2173_v34 = vsel %vm1109_vm11, 1.0, %v2808_v48 }
 0x1d4   :  { %v974_v39 = vpop.xlane.xlu1 %973  ;;  %2561 = vmatprep.mubr.msk.f32.mxu1 %vm890_vm0, %v2173_v34 }
 0x1d5   :  { %vm1112_vm12 = vcmp.eq.s32.totalorder %v974_v39, %v3119_v26  ;;  %2562 = vmatmul.mubr.msk.f32.gmra.mrb[24].mxu1 %vm890_vm0, %v2174_v33  ;;  %v971_v20 = vpop.xlane.xlu0 %970 }
 0x1d6   :  { %vm1111_vm13 = vcmp.eq.s32.totalorder %v971_v20, %v3119_v26  ;;  %v2176_v25 = vsel %vm1112_vm12, 1.0, %v2808_v48 }
 0x1d7   :  { %v2175_v40 = vsel %vm1111_vm13, 1.0, %v2808_v48 }
 0x1d8   :  { %v980_v41 = vpop.xlane.xlu1 %979  ;;  %2564 = vmatprep.mubr.msk.f32.mxu1 %vm890_vm0, %v2175_v40 }
 0x1d9   :  { %vm1114_vm14 = vcmp.eq.s32.totalorder %v980_v41, %v3119_v26  ;;  %2565 = vmatmul.mubr.msk.f32.gmra.mrb[26].mxu1 %vm890_vm0, %v2176_v25  ;;  %v977_v42 = vpop.xlane.xlu0 %976 }
 0x1da   :  { %vm1113_vm15 = vcmp.eq.s32.totalorder %v977_v42, %v3119_v26  ;;  %v2178_v16 = vsel %vm1114_vm14, 1.0, %v2808_v48 }
 0x1db   :  { %v2177_v43 = vsel %vm1113_vm15, 1.0, %v2808_v48 }
 0x1dc   :  { %v986_v45 = vpop.xlane.xlu1 %985  ;;  %2567 = vmatprep.mubr.msk.f32.mxu1 %vm890_vm0, %v2177_v43 }
 0x1dd   :  { %vm1116_vm1 = vcmp.eq.s32.totalorder %v986_v45, %v3119_v26  ;;  %2568 = vmatmul.mubr.msk.f32.gmra.mrb[28].mxu1 %vm890_vm0, %v2178_v16  ;;  %v983_v12 = vpop.xlane.xlu0 %982 }
 0x1de   :  { %vm1115_vm2 = vcmp.eq.s32.totalorder %v983_v12, %v3119_v26  ;;  %v2180_v17 = vsel %vm1116_vm1, 1.0, %v2808_v48 }
 0x1df   :  { %v2179_v28 = vsel %vm1115_vm2, 1.0, %v2808_v48 }
 0x1e0   :  { %v992_v29 = vpop.xlane.xlu1 %991  ;;  %2570 = vmatprep.mubr.msk.f32.mxu1 %vm890_vm0, %v2179_v28 }
 0x1e1   :  { %vm1118_vm3 = vcmp.eq.s32.totalorder %v992_v29, %v3119_v26  ;;  %2571 = vmatmul.mubr.msk.f32.gmra.mrb[30].mxu1 %vm890_vm0, %v2180_v17  ;;  %v989_v51 = vpop.xlane.xlu0 %988 }
 0x1e2   :  { %vm1117_vm4 = vcmp.eq.s32.totalorder %v989_v51, %v3119_v26  ;;  %v2182_v27 = vsel %vm1118_vm3, 1.0, %v2808_v48 }
 0x1e3   :  { %v2181_v53 = vsel %vm1117_vm4, 1.0, %v2808_v48 }
 0x1e4   :  { %v998_v52 = vpop.xlane.xlu1 %997  ;;  %2573 = vmatprep.mubr.msk.f32.mxu1 %vm890_vm0, %v2181_v53 }
 0x1e5   :  { %vm1120_vm5 = vcmp.eq.s32.totalorder %v998_v52, %v3119_v26  ;;  %2574 = vmatmul.mubr.msk.f32.gmra.mrb[32].mxu1 %vm890_vm0, %v2182_v27  ;;  %v995_v54 = vpop.xlane.xlu0 %994  ;;  %v2644_v27 = vld [vmem:[#allocation2 + $0x8] sm:$0xff] }
 0x1e6   :  { %vm1119_vm6 = vcmp.eq.s32.totalorder %v995_v54, %v3119_v26  ;;  %v2184_v36 = vsel %vm1120_vm5, 1.0, %v2808_v48 }
 0x1e7   :  { %v2183_v55 = vsel %vm1119_vm6, 1.0, %v2808_v48 }
 0x1e8   :  { %v1004_v18 = vpop.xlane.xlu1 %1003  ;;  %2576 = vmatprep.mubr.msk.f32.mxu1 %vm890_vm0, %v2183_v55  ;;  %v2645_v55 = vld [vmem:[#allocation2] sm:$0xff] }
 0x1e9   :  { %vm1122_vm7 = vcmp.eq.s32.totalorder %v1004_v18, %v3119_v26  ;;  %2577 = vmatmul.mubr.msk.f32.gmra.mrb[34].mxu1 %vm890_vm0, %v2184_v36  ;;  %v1001_v56 = vpop.xlane.xlu0 %1000 }
 0x1ea   :  { %vm1121_vm8 = vcmp.eq.s32.totalorder %v1001_v56, %v3119_v26  ;;  %v2186_v1 = vsel %vm1122_vm7, 1.0, %v2808_v48 }
 0x1eb   :  { %v2185_v44 = vsel %vm1121_vm8, 1.0, %v2808_v48 }
 0x1ec   :  { %v1010_v31 = vpop.xlane.xlu1 %1009  ;;  %2579 = vmatprep.mubr.msk.f32.mxu1 %vm890_vm0, %v2185_v44 }
 0x1ed   :  { %vm1124_vm9 = vcmp.eq.s32.totalorder %v1010_v31, %v3119_v26  ;;  %2580 = vmatmul.mubr.msk.f32.gmra.mrb[36].mxu1 %vm890_vm0, %v2186_v1  ;;  %v1007_v58 = vpop.xlane.xlu0 %1006  ;;  %v2646_v31 = vld [vmem:[#allocation2 + $0x18] sm:$0xff] }
 0x1ee   :  { %vm1123_vm10 = vcmp.eq.s32.totalorder %v1007_v58, %v3119_v26  ;;  %v2188_v59 = vsel %vm1124_vm9, 1.0, %v2808_v48  ;;  %v2647_v58 = vld [vmem:[#allocation2 + $0x10] sm:$0xff] }
 0x1ef   :  { %v2187_v3 = vsel %vm1123_vm10, 1.0, %v2808_v48 }
 0x1f0   :  { %v1016_v60 = vpop.xlane.xlu1 %1015  ;;  %2582 = vmatprep.mubr.msk.f32.mxu1 %vm890_vm0, %v2187_v3 }
 0x1f1   :  { %vm1126_vm11 = vcmp.eq.s32.totalorder %v1016_v60, %v3119_v26  ;;  %2583 = vmatmul.mubr.msk.f32.gmra.mrb[38].mxu1 %vm890_vm0, %v2188_v59  ;;  %v1013_v61 = vpop.xlane.xlu0 %1012 }
 0x1f2   :  { %vm1125_vm12 = vcmp.eq.s32.totalorder %v1013_v61, %v3119_v26  ;;  %v2190_v57 = vsel %vm1126_vm11, 1.0, %v2808_v48 }
 0x1f3   :  { %v2189_v62 = vsel %vm1125_vm12, 1.0, %v2808_v48 }
 0x1f4   :  { %v1022_v63 = vpop.xlane.xlu1 %1021  ;;  %2585 = vmatprep.mubr.msk.f32.mxu1 %vm890_vm0, %v2189_v62 }
 0x1f5   :  { %vm1128_vm13 = vcmp.eq.s32.totalorder %v1022_v63, %v3119_v26  ;;  %2586 = vmatmul.mubr.msk.f32.gmra.mrb[40].mxu1 %vm890_vm0, %v2190_v57  ;;  %v1019_v2 = vpop.xlane.xlu0 %1018  ;;  %v2648_v63 = vld [vmem:[#allocation2 + $0x28] sm:$0xff] }
 0x1f6   :  { %vm1127_vm14 = vcmp.eq.s32.totalorder %v1019_v2, %v3119_v26  ;;  %v2192_v5 = vsel %vm1128_vm13, 1.0, %v2808_v48 }
 0x1f7   :  { %v2191_v19 = vsel %vm1127_vm14, 1.0, %v2808_v48 }
 0x1f8   :  { %v1028_v23 = vpop.xlane.xlu1 %1027  ;;  %2588 = vmatprep.mubr.msk.f32.mxu1 %vm890_vm0, %v2191_v19  ;;  %v2649_v19 = vld [vmem:[#allocation2 + $0x20] sm:$0xff] }
 0x1f9   :  { %vm1130_vm15 = vcmp.eq.s32.totalorder %v1028_v23, %v3119_v26  ;;  %2589 = vmatmul.mubr.msk.f32.gmra.mrb[42].mxu1 %vm890_vm0, %v2192_v5  ;;  %v1025_v47 = vpop.xlane.xlu0 %1024 }
 0x1fa   :  { %vm1129_vm1 = vcmp.eq.s32.totalorder %v1025_v47, %v3119_v26  ;;  %v2194_v6 = vsel %vm1130_vm15, 1.0, %v2808_v48 }
 0x1fb   :  { %v2193_v21 = vsel %vm1129_vm1, 1.0, %v2808_v48 }
 0x1fc   :  { %v1034_v50 = vpop.xlane.xlu1 %1033  ;;  %2591 = vmatprep.mubr.msk.f32.mxu1 %vm890_vm0, %v2193_v21 }
 0x1fd   :  { %vm1132_vm2 = vcmp.eq.s32.totalorder %v1034_v50, %v3119_v26  ;;  %2592 = vmatmul.mubr.msk.f32.gmra.mrb[44].mxu1 %vm890_vm0, %v2194_v6  ;;  %v1031_v7 = vpop.xlane.xlu0 %1030 }
 0x1fe   :  { %vm1131_vm3 = vcmp.eq.s32.totalorder %v1031_v7, %v3119_v26  ;;  %v2196_v37 = vsel %vm1132_vm2, 1.0, %v2808_v48 }
 0x1ff   :  { %v2195_v8 = vsel %vm1131_vm3, 1.0, %v2808_v48 }
 0x200   :  { %v1040_v10 = vpop.xlane.xlu1 %1039  ;;  %2594 = vmatprep.mubr.msk.f32.mxu1 %vm890_vm0, %v2195_v8  ;;  %v2650_v8 = vld [vmem:[#allocation2 + $0x38] sm:$0xff] }
 0x201   :  { %vm1134_vm4 = vcmp.eq.s32.totalorder %v1040_v10, %v3119_v26  ;;  %2595 = vmatmul.mubr.msk.f32.gmra.mrb[46].mxu1 %vm890_vm0, %v2196_v37  ;;  %v1037_v11 = vpop.xlane.xlu0 %1036  ;;  %v2651_v10 = vld [vmem:[#allocation2 + $0x30] sm:$0xff] }
 0x202   :  { %vm1133_vm5 = vcmp.eq.s32.totalorder %v1037_v11, %v3119_v26  ;;  %v2198_v46 = vsel %vm1134_vm4, 1.0, %v2808_v48 }
 0x203   :  { %v2197_v22 = vsel %vm1133_vm5, 1.0, %v2808_v48 }
 0x204   :  { %v1046_v9 = vpop.xlane.xlu1 %1045  ;;  %2597 = vmatprep.mubr.msk.f32.mxu1 %vm890_vm0, %v2197_v22 }
 0x205   :  { %vm1136_vm6 = vcmp.eq.s32.totalorder %v1046_v9, %v3119_v26  ;;  %2598 = vmatmul.mubr.msk.f32.gmra.mrb[48].mxu1 %vm890_vm0, %v2198_v46  ;;  %v1043_v0 = vpop.xlane.xlu0 %1042 }
 0x206   :  { %vm1135_vm7 = vcmp.eq.s32.totalorder %v1043_v0, %v3119_v26  ;;  %v2200_v49 = vsel %vm1136_vm6, 1.0, %v2808_v48 }
 0x207   :  { %v2199_v13 = vsel %vm1135_vm7, 1.0, %v2808_v48 }
 0x208   :  { %v1052_v30 = vpop.xlane.xlu1 %1051  ;;  %2600 = vmatprep.mubr.msk.f32.mxu1 %vm890_vm0, %v2199_v13 }
 0x209   :  { %vm1138_vm8 = vcmp.eq.s32.totalorder %v1052_v30, %v3119_v26  ;;  %2601 = vmatmul.mubr.msk.f32.gmra.mrb[50].mxu1 %vm890_vm0, %v2200_v49  ;;  %v1049_v4 = vpop.xlane.xlu0 %1048  ;;  %v2652_v30 = vld [vmem:[#allocation2 + $0x48] sm:$0xff] }
 0x20a   :  { %vm1137_vm9 = vcmp.eq.s32.totalorder %v1049_v4, %v3119_v26  ;;  %v2202_v14 = vsel %vm1138_vm8, 1.0, %v2808_v48 }
 0x20b   :  { %v2201_v32 = vsel %vm1137_vm9, 1.0, %v2808_v48 }
 0x20c   :  { %v1058_v35 = vpop.xlane.xlu1 %1057  ;;  %2603 = vmatprep.mubr.msk.f32.mxu1 %vm890_vm0, %v2201_v32  ;;  %v2653_v32 = vld [vmem:[#allocation2 + $0x40] sm:$0xff] }
 0x20d   :  { %vm1140_vm10 = vcmp.eq.s32.totalorder %v1058_v35, %v3119_v26  ;;  %2604 = vmatmul.mubr.msk.f32.gmra.mrb[52].mxu1 %vm890_vm0, %v2202_v14  ;;  %v1055_v15 = vpop.xlane.xlu0 %1054 }
 0x20e   :  { %vm1139_vm11 = vcmp.eq.s32.totalorder %v1055_v15, %v3119_v26  ;;  %v2204_v24 = vsel %vm1140_vm10, 1.0, %v2808_v48 }
 0x20f   :  { %v2203_v38 = vsel %vm1139_vm11, 1.0, %v2808_v48 }
 0x210   :  { %v1064_v34 = vpop.xlane.xlu1 %1063  ;;  %2606 = vmatprep.mubr.msk.f32.mxu1 %vm890_vm0, %v2203_v38 }
 0x211   :  { %vm1142_vm12 = vcmp.eq.s32.totalorder %v1064_v34, %v3119_v26  ;;  %2607 = vmatmul.mubr.msk.f32.gmra.mrb[54].mxu1 %vm890_vm0, %v2204_v24  ;;  %v1061_v33 = vpop.xlane.xlu0 %1060 }
 0x212   :  { %vm1141_vm13 = vcmp.eq.s32.totalorder %v1061_v33, %v3119_v26  ;;  %v2206_v20 = vsel %vm1142_vm12, 1.0, %v2808_v48 }
 0x213   :  { %v2205_v39 = vsel %vm1141_vm13, 1.0, %v2808_v48 }
 0x214   :  { %v1070_v40 = vpop.xlane.xlu1 %1069  ;;  %2609 = vmatprep.mubr.msk.f32.mxu1 %vm890_vm0, %v2205_v39  ;;  %v2654_v39 = vld [vmem:[#allocation2 + $0x58] sm:$0xff] }
 0x215   :  { %vm1144_vm14 = vcmp.eq.s32.totalorder %v1070_v40, %v3119_v26  ;;  %2610 = vmatmul.mubr.msk.f32.gmra.mrb[56].mxu1 %vm890_vm0, %v2206_v20  ;;  %v1067_v25 = vpop.xlane.xlu0 %1066  ;;  %v2655_v40 = vld [vmem:[#allocation2 + $0x50] sm:$0xff] }
 0x216   :  { %vm1143_vm15 = vcmp.eq.s32.totalorder %v1067_v25, %v3119_v26  ;;  %v2208_v42 = vsel %vm1144_vm14, 1.0, %v2808_v48 }
 0x217   :  { %v2207_v41 = vsel %vm1143_vm15, 1.0, %v2808_v48 }
 0x218   :  { %v1076_v43 = vpop.xlane.xlu1 %1075  ;;  %2612 = vmatprep.mubr.msk.f32.mxu1 %vm890_vm0, %v2207_v41 }
 0x219   :  { %vm1146_vm1 = vcmp.eq.s32.totalorder %v1076_v43, %v3119_v26  ;;  %2613 = vmatmul.mubr.msk.f32.gmra.mrb[58].mxu1 %vm890_vm0, %v2208_v42  ;;  %v1073_v16 = vpop.xlane.xlu0 %1072 }
 0x21a   :  { %vm1145_vm2 = vcmp.eq.s32.totalorder %v1073_v16, %v3119_v26  ;;  %v2210_v12 = vsel %vm1146_vm1, 1.0, %v2808_v48 }
 0x21b   :  { %v2209_v45 = vsel %vm1145_vm2, 1.0, %v2808_v48 }
 0x21c   :  { %v1082_v28 = vpop.xlane.xlu1 %1081  ;;  %2615 = vmatprep.mubr.msk.f32.mxu1 %vm890_vm0, %v2209_v45 }
 0x21d   :  { %vm1148_vm3 = vcmp.eq.s32.totalorder %v1082_v28, %v3119_v26  ;;  %2616 = vmatmul.mubr.msk.f32.gmra.mrb[60].mxu1 %vm890_vm0, %v2210_v12  ;;  %v1079_v17 = vpop.xlane.xlu0 %1078  ;;  %v2656_v28 = vld [vmem:[#allocation2 + $0x68] sm:$0xff] }
 0x21e   :  { %vm1147_vm4 = vcmp.eq.s32.totalorder %v1079_v17, %v3119_v26  ;;  %v2212_v51 = vsel %vm1148_vm3, 1.0, %v2808_v48 }
 0x21f   :  { %v2211_v29 = vsel %vm1147_vm4, 1.0, %v2808_v48 }
 0x220   :  { %2618 = vmatprep.mubr.msk.f32.mxu1 %vm890_vm0, %v2211_v29  ;;  %v2657_v29 = vld [vmem:[#allocation2 + $0x60] sm:$0xff] }
 0x221   :  { %2619 = vmatmul.mubr.msk.f32.gmra.mrb[62].mxu1 %vm890_vm0, %v2212_v51 }
 0x278   :  { %v2527_v53 = vpop.f32.mrb[0].mxu1 }
 0x279   :  { %1855 = vst [vmem:[#allocation7 + $0x8] sm:$0xff] %v2527_v53  ;;  %v1919_v52 = vsub.f32 %v2527_v53, %v2644_v27  ;;  %v1535_v54 = vpop.f32.mrb[1].mxu1 }
 0x27a   :  { %1854 = vst [vmem:[#allocation7] sm:$0xff] %v1535_v54  ;;  %v1918_v36 = vsub.f32 %v1535_v54, %v2645_v55 }
 0x27b   :  { %v1983_v18 = vmul.f32 %v1919_v52, %v1919_v52 }
 0x27c   :  { %v1982_v56 = vmul.f32 %v1918_v36, %v1918_v36  ;;  %v2530_v44 = vpop.f32.mrb[2].mxu1 }
 0x27d   :  { %1857 = vst [vmem:[#allocation7 + $0x18] sm:$0xff] %v2530_v44  ;;  %v1545_v26 = vpop.f32.mrb[3].mxu1  ;;  %v1921_v48 = vsub.f32 %v2530_v44, %v2646_v31  ;;  %v2659_v44 = vld [vmem:[#allocation2 + $0x70] sm:$0xff] }
 0x27e   :  { %v2046_v1 = vadd.f32 %v1983_v18, %v1982_v56  ;;  %1856 = vst [vmem:[#allocation7 + $0x10] sm:$0xff] %v1545_v26  ;;  %v1920_v3 = vsub.f32 %v1545_v26, %v2647_v58  ;;  %v2658_v18 = vld [vmem:[#allocation2 + $0x78] sm:$0xff] }
 0x27f   :  { %v1985_v62 = vmul.f32 %v1921_v48, %v1921_v48 }
 0x280   :  { %v1984_v59 = vmul.f32 %v1920_v3, %v1920_v3  ;;  %v2533_v60 = vpop.f32.mrb[4].mxu1 }
 0x281   :  { %1859 = vst [vmem:[#allocation7 + $0x28] sm:$0xff] %v2533_v60  ;;  %v1555_v61 = vpop.f32.mrb[5].mxu1  ;;  %v1923_v2 = vsub.f32 %v2533_v60, %v2648_v63  ;;  %v2660_v60 = vld [vmem:[#allocation2 + $0x88] sm:$0xff] }
 0x282   :  { %v2047_v57 = vadd.f32 %v2046_v1, %v1984_v59  ;;  %1858 = vst [vmem:[#allocation7 + $0x20] sm:$0xff] %v1555_v61  ;;  %v1922_v5 = vsub.f32 %v1555_v61, %v2649_v19 }
 0x283   :  { %v1987_v50 = vmul.f32 %v1923_v2, %v1923_v2 }
 0x284   :  { %v2048_v23 = vadd.f32 %v2047_v57, %v1985_v62  ;;  %v1986_v47 = vmul.f32 %v1922_v5, %v1922_v5  ;;  %v2536_v21 = vpop.f32.mrb[6].mxu1  ;;  %v2661_v62 = vld [vmem:[#allocation2 + $0x80] sm:$0xff] }
 0x285   :  { %1861 = vst [vmem:[#allocation7 + $0x38] sm:$0xff] %v2536_v21  ;;  %v1565_v6 = vpop.f32.mrb[7].mxu1  ;;  %v1925_v37 = vsub.f32 %v2536_v21, %v2650_v8  ;;  %v2662_v21 = vld [vmem:[#allocation2 + $0x98] sm:$0xff] }
 0x286   :  { %v2049_v7 = vadd.f32 %v2048_v23, %v1986_v47  ;;  %1860 = vst [vmem:[#allocation7 + $0x30] sm:$0xff] %v1565_v6  ;;  %v1924_v11 = vsub.f32 %v1565_v6, %v2651_v10 }
 0x287   :  { %v1989_v13 = vmul.f32 %v1925_v37, %v1925_v37 }
 0x288   :  { %v1988_v22 = vmul.f32 %v1924_v11, %v1924_v11  ;;  %v2050_v46 = vadd.f32 %v2049_v7, %v1987_v50  ;;  %v2539_v9 = vpop.f32.mrb[8].mxu1  ;;  %v2663_v50 = vld [vmem:[#allocation2 + $0x90] sm:$0xff] }
 0x289   :  { %1863 = vst [vmem:[#allocation7 + $0x48] sm:$0xff] %v2539_v9  ;;  %v1575_v0 = vpop.f32.mrb[9].mxu1  ;;  %v1927_v4 = vsub.f32 %v2539_v9, %v2652_v30  ;;  %v2664_v9 = vld [vmem:[#allocation2 + $0xa8] sm:$0xff] }
 0x28a   :  { %v2051_v49 = vadd.f32 %v2050_v46, %v1988_v22  ;;  %1862 = vst [vmem:[#allocation7 + $0x40] sm:$0xff] %v1575_v0  ;;  %v1926_v14 = vsub.f32 %v1575_v0, %v2653_v32 }
 0x28b   :  { %v1991_v34 = vmul.f32 %v1927_v4, %v1927_v4 }
 0x28c   :  { %v1990_v35 = vmul.f32 %v1926_v14, %v1926_v14  ;;  %v2052_v15 = vadd.f32 %v2051_v49, %v1989_v13  ;;  %v2542_v38 = vpop.f32.mrb[10].mxu1  ;;  %v2665_v13 = vld [vmem:[#allocation2 + $0xa0] sm:$0xff] }
 0x28d   :  { %1865 = vst [vmem:[#allocation7 + $0x58] sm:$0xff] %v2542_v38  ;;  %v1585_v24 = vpop.f32.mrb[11].mxu1  ;;  %v1929_v20 = vsub.f32 %v2542_v38, %v2654_v39  ;;  %v2666_v38 = vld [vmem:[#allocation2 + $0xb8] sm:$0xff] }
 0x28e   :  { %v2053_v33 = vadd.f32 %v2052_v15, %v1990_v35  ;;  %1864 = vst [vmem:[#allocation7 + $0x50] sm:$0xff] %v1585_v24  ;;  %v1928_v25 = vsub.f32 %v1585_v24, %v2655_v40 }
 0x28f   :  { %v1993_v45 = vmul.f32 %v1929_v20, %v1929_v20 }
 0x290   :  { %v1992_v41 = vmul.f32 %v1928_v25, %v1928_v25  ;;  %v2054_v42 = vadd.f32 %v2053_v33, %v1991_v34  ;;  %v2545_v43 = vpop.f32.mrb[12].mxu1  ;;  %v2667_v34 = vld [vmem:[#allocation2 + $0xb0] sm:$0xff] }
 0x291   :  { %1867 = vst [vmem:[#allocation7 + $0x68] sm:$0xff] %v2545_v43  ;;  %v1595_v16 = vpop.f32.mrb[13].mxu1  ;;  %v1931_v17 = vsub.f32 %v2545_v43, %v2656_v28  ;;  %v2668_v43 = vld [vmem:[#allocation2 + $0xc8] sm:$0xff] }
 0x292   :  { %v2055_v12 = vadd.f32 %v2054_v42, %v1992_v41  ;;  %1866 = vst [vmem:[#allocation7 + $0x60] sm:$0xff] %v1595_v16  ;;  %v1930_v51 = vsub.f32 %v1595_v16, %v2657_v29 }
 0x293   :  { %v1995_v55 = vmul.f32 %v1931_v17, %v1931_v17 }
 0x294   :  { %v1994_v53 = vmul.f32 %v1930_v51, %v1930_v51  ;;  %v2056_v27 = vadd.f32 %v2055_v12, %v1993_v45  ;;  %v2548_v52 = vpop.f32.mrb[14].mxu1  ;;  %v2669_v45 = vld [vmem:[#allocation2 + $0xc0] sm:$0xff] }
 0x295   :  { %1869 = vst [vmem:[#allocation7 + $0x78] sm:$0xff] %v2548_v52  ;;  %v1605_v54 = vpop.f32.mrb[15].mxu1  ;;  %v1933_v56 = vsub.f32 %v2548_v52, %v2658_v18  ;;  %v2670_v52 = vld [vmem:[#allocation2 + $0xd8] sm:$0xff] }
 0x296   :  { %v2057_v36 = vadd.f32 %v2056_v27, %v1994_v53  ;;  %1868 = vst [vmem:[#allocation7 + $0x70] sm:$0xff] %v1605_v54  ;;  %v1932_v26 = vsub.f32 %v1605_v54, %v2659_v44 }
 0x297   :  { %v1997_v3 = vmul.f32 %v1933_v56, %v1933_v56 }
 0x298   :  { %v1996_v1 = vmul.f32 %v1932_v26, %v1932_v26  ;;  %v2058_v31 = vadd.f32 %v2057_v36, %v1995_v55  ;;  %v2551_v48 = vpop.f32.mrb[16].mxu1  ;;  %v2671_v55 = vld [vmem:[#allocation2 + $0xd0] sm:$0xff] }
 0x299   :  { %1871 = vst [vmem:[#allocation7 + $0x88] sm:$0xff] %v2551_v48  ;;  %v1615_v58 = vpop.f32.mrb[17].mxu1  ;;  %v1935_v61 = vsub.f32 %v2551_v48, %v2660_v60  ;;  %v2672_v48 = vld [vmem:[#allocation2 + $0xe8] sm:$0xff] }
 0x29a   :  { %v2059_v59 = vadd.f32 %v2058_v31, %v1996_v1  ;;  %1870 = vst [vmem:[#allocation7 + $0x80] sm:$0xff] %v1615_v58  ;;  %v1934_v57 = vsub.f32 %v1615_v58, %v2661_v62 }
 0x29b   :  { %v1999_v23 = vmul.f32 %v1935_v61, %v1935_v61 }
 0x29c   :  { %v1998_v63 = vmul.f32 %v1934_v57, %v1934_v57  ;;  %v2060_v2 = vadd.f32 %v2059_v59, %v1997_v3  ;;  %v2554_v19 = vpop.f32.mrb[18].mxu1  ;;  %v2673_v3 = vld [vmem:[#allocation2 + $0xe0] sm:$0xff] }
 0x29d   :  { %1873 = vst [vmem:[#allocation7 + $0x98] sm:$0xff] %v2554_v19  ;;  %v1625_v5 = vpop.f32.mrb[19].mxu1  ;;  %v1937_v6 = vsub.f32 %v2554_v19, %v2662_v21  ;;  %v2674_v19 = vld [vmem:[#allocation2 + $0xf8] sm:$0xff] }
 0x29e   :  { %v2061_v47 = vadd.f32 %v2060_v2, %v1998_v63  ;;  %1872 = vst [vmem:[#allocation7 + $0x90] sm:$0xff] %v1625_v5  ;;  %v1936_v7 = vsub.f32 %v1625_v5, %v2663_v50 }
 0x29f   :  { %v2001_v22 = vmul.f32 %v1937_v6, %v1937_v6 }
 0x2a0   :  { %v2000_v8 = vmul.f32 %v1936_v7, %v1936_v7  ;;  %v2062_v37 = vadd.f32 %v2061_v47, %v1999_v23  ;;  %v2557_v10 = vpop.f32.mrb[20].mxu1  ;;  %v2675_v23 = vld [vmem:[#allocation2 + $0xf0] sm:$0xff] }
 0x2a1   :  { %1875 = vst [vmem:[#allocation7 + $0xa8] sm:$0xff] %v2557_v10  ;;  %v1635_v11 = vpop.f32.mrb[21].mxu1  ;;  %v1939_v0 = vsub.f32 %v2557_v10, %v2664_v9  ;;  %v2676_v10 = vld [vmem:[#allocation2 + $0x108] sm:$0xff] }
 0x2a2   :  { %v2063_v46 = vadd.f32 %v2062_v37, %v2000_v8  ;;  %1874 = vst [vmem:[#allocation7 + $0xa0] sm:$0xff] %v1635_v11  ;;  %v1938_v49 = vsub.f32 %v1635_v11, %v2665_v13 }
 0x2a3   :  { %v2003_v35 = vmul.f32 %v1939_v0, %v1939_v0 }
 0x2a4   :  { %v2002_v30 = vmul.f32 %v1938_v49, %v1938_v49  ;;  %v2064_v4 = vadd.f32 %v2063_v46, %v2001_v22  ;;  %v2560_v32 = vpop.f32.mrb[22].mxu1  ;;  %v2677_v22 = vld [vmem:[#allocation2 + $0x100] sm:$0xff] }
 0x2a5   :  { %1877 = vst [vmem:[#allocation7 + $0xb8] sm:$0xff] %v2560_v32  ;;  %v1645_v14 = vpop.f32.mrb[23].mxu1  ;;  %v1941_v24 = vsub.f32 %v2560_v32, %v2666_v38  ;;  %v2678_v32 = vld [vmem:[#allocation2 + $0x118] sm:$0xff] }
 0x2a6   :  { %v2065_v15 = vadd.f32 %v2064_v4, %v2002_v30  ;;  %1876 = vst [vmem:[#allocation7 + $0xb0] sm:$0xff] %v1645_v14  ;;  %v1940_v33 = vsub.f32 %v1645_v14, %v2667_v34 }
 0x2a7   :  { %v2005_v41 = vmul.f32 %v1941_v24, %v1941_v24 }
 0x2a8   :  { %v2004_v39 = vmul.f32 %v1940_v33, %v1940_v33  ;;  %v2066_v20 = vadd.f32 %v2065_v15, %v2003_v35  ;;  %v2563_v40 = vpop.f32.mrb[24].mxu1  ;;  %v2679_v35 = vld [vmem:[#allocation2 + $0x110] sm:$0xff] }
 0x2a9   :  { %1879 = vst [vmem:[#allocation7 + $0xc8] sm:$0xff] %v2563_v40  ;;  %v1655_v25 = vpop.f32.mrb[25].mxu1  ;;  %v1943_v16 = vsub.f32 %v2563_v40, %v2668_v43  ;;  %v2680_v40 = vld [vmem:[#allocation2 + $0x128] sm:$0xff] }
 0x2aa   :  { %v2067_v42 = vadd.f32 %v2066_v20, %v2004_v39  ;;  %1878 = vst [vmem:[#allocation7 + $0xc0] sm:$0xff] %v1655_v25  ;;  %v1942_v12 = vsub.f32 %v1655_v25, %v2669_v45 }
 0x2ab   :  { %v2007_v53 = vmul.f32 %v1943_v16, %v1943_v16 }
 0x2ac   :  { %v2006_v28 = vmul.f32 %v1942_v12, %v1942_v12  ;;  %v2068_v17 = vadd.f32 %v2067_v42, %v2005_v41  ;;  %v2566_v29 = vpop.f32.mrb[26].mxu1  ;;  %v2681_v41 = vld [vmem:[#allocation2 + $0x120] sm:$0xff] }
 0x2ad   :  { %1881 = vst [vmem:[#allocation7 + $0xd8] sm:$0xff] %v2566_v29  ;;  %v1665_v51 = vpop.f32.mrb[27].mxu1  ;;  %v1945_v54 = vsub.f32 %v2566_v29, %v2670_v52  ;;  %v2682_v29 = vld [vmem:[#allocation2 + $0x138] sm:$0xff] }
 0x2ae   :  { %v2069_v27 = vadd.f32 %v2068_v17, %v2006_v28  ;;  %1880 = vst [vmem:[#allocation7 + $0xd0] sm:$0xff] %v1665_v51  ;;  %v1944_v36 = vsub.f32 %v1665_v51, %v2671_v55 }
 0x2af   :  { %v2009_v1 = vmul.f32 %v1945_v54, %v1945_v54 }
 0x2b0   :  { %v2008_v18 = vmul.f32 %v1944_v36, %v1944_v36  ;;  %v2070_v56 = vadd.f32 %v2069_v27, %v2007_v53  ;;  %v2569_v44 = vpop.f32.mrb[28].mxu1  ;;  %v2683_v53 = vld [vmem:[#allocation2 + $0x130] sm:$0xff] }
 0x2b1   :  { %1883 = vst [vmem:[#allocation7 + $0xe8] sm:$0xff] %v2569_v44  ;;  %v1675_v26 = vpop.f32.mrb[29].mxu1  ;;  %v1947_v58 = vsub.f32 %v2569_v44, %v2672_v48  ;;  %v2684_v44 = vld [vmem:[#allocation2 + $0x148] sm:$0xff] }
 0x2b2   :  { %v2071_v31 = vadd.f32 %v2070_v56, %v2008_v18  ;;  %1882 = vst [vmem:[#allocation7 + $0xe0] sm:$0xff] %v1675_v26  ;;  %v1946_v59 = vsub.f32 %v1675_v26, %v2673_v3 }
 0x2b3   :  { %v2011_v63 = vmul.f32 %v1947_v58, %v1947_v58 }
 0x2b4   :  { %v2010_v60 = vmul.f32 %v1946_v59, %v1946_v59  ;;  %v2072_v61 = vadd.f32 %v2071_v31, %v2009_v1  ;;  %v2572_v62 = vpop.f32.mrb[30].mxu1  ;;  %v2685_v1 = vld [vmem:[#allocation2 + $0x140] sm:$0xff] }
 0x2b5   :  { %1885 = vst [vmem:[#allocation7 + $0xf8] sm:$0xff] %v2572_v62  ;;  %v1685_v57 = vpop.f32.mrb[31].mxu1  ;;  %v1949_v5 = vsub.f32 %v2572_v62, %v2674_v19  ;;  %v2686_v62 = vld [vmem:[#allocation2 + $0x158] sm:$0xff] }
 0x2b6   :  { %v2073_v2 = vadd.f32 %v2072_v61, %v2010_v60  ;;  %1884 = vst [vmem:[#allocation7 + $0xf0] sm:$0xff] %v1685_v57  ;;  %v1948_v47 = vsub.f32 %v1685_v57, %v2675_v23 }
 0x2b7   :  { %v2013_v8 = vmul.f32 %v1949_v5, %v1949_v5 }
 0x2b8   :  { %v2012_v21 = vmul.f32 %v1948_v47, %v1948_v47  ;;  %v2074_v6 = vadd.f32 %v2073_v2, %v2011_v63  ;;  %v2575_v50 = vpop.f32.mrb[32].mxu1  ;;  %v2687_v63 = vld [vmem:[#allocation2 + $0x150] sm:$0xff] }
 0x2b9   :  { %1887 = vst [vmem:[#allocation7 + $0x108] sm:$0xff] %v2575_v50  ;;  %v1695_v7 = vpop.f32.mrb[33].mxu1  ;;  %v1951_v11 = vsub.f32 %v2575_v50, %v2676_v10  ;;  %v2688_v50 = vld [vmem:[#allocation2 + $0x168] sm:$0xff] }
 0x2ba   :  { %v2075_v37 = vadd.f32 %v2074_v6, %v2012_v21  ;;  %1886 = vst [vmem:[#allocation7 + $0x100] sm:$0xff] %v1695_v7  ;;  %v1950_v46 = vsub.f32 %v1695_v7, %v2677_v22 }
 0x2bb   :  { %v2015_v30 = vmul.f32 %v1951_v11, %v1951_v11 }
 0x2bc   :  { %v2014_v9 = vmul.f32 %v1950_v46, %v1950_v46  ;;  %v2076_v0 = vadd.f32 %v2075_v37, %v2013_v8  ;;  %v2578_v13 = vpop.f32.mrb[34].mxu1  ;;  %v2689_v8 = vld [vmem:[#allocation2 + $0x160] sm:$0xff] }
 0x2bd   :  { %1889 = vst [vmem:[#allocation7 + $0x118] sm:$0xff] %v2578_v13  ;;  %v1705_v49 = vpop.f32.mrb[35].mxu1  ;;  %v1953_v14 = vsub.f32 %v2578_v13, %v2678_v32  ;;  %v2690_v13 = vld [vmem:[#allocation2 + $0x178] sm:$0xff] }
 0x2be   :  { %v2077_v4 = vadd.f32 %v2076_v0, %v2014_v9  ;;  %1888 = vst [vmem:[#allocation7 + $0x110] sm:$0xff] %v1705_v49  ;;  %v1952_v15 = vsub.f32 %v1705_v49, %v2679_v35 }
 0x2bf   :  { %v2017_v39 = vmul.f32 %v1953_v14, %v1953_v14 }
 0x2c0   :  { %v2016_v38 = vmul.f32 %v1952_v15, %v1952_v15  ;;  %v2078_v24 = vadd.f32 %v2077_v4, %v2015_v30  ;;  %v2581_v34 = vpop.f32.mrb[36].mxu1  ;;  %v2691_v30 = vld [vmem:[#allocation2 + $0x170] sm:$0xff] }
 0x2c1   :  { %1891 = vst [vmem:[#allocation7 + $0x128] sm:$0xff] %v2581_v34  ;;  %v1715_v33 = vpop.f32.mrb[37].mxu1  ;;  %v1955_v25 = vsub.f32 %v2581_v34, %v2680_v40  ;;  %v2692_v34 = vld [vmem:[#allocation2 + $0x188] sm:$0xff] }
 0x2c2   :  { %v2079_v20 = vadd.f32 %v2078_v24, %v2016_v38  ;;  %1890 = vst [vmem:[#allocation7 + $0x120] sm:$0xff] %v1715_v33  ;;  %v1954_v42 = vsub.f32 %v1715_v33, %v2681_v41 }
 0x2c3   :  { %v2019_v28 = vmul.f32 %v1955_v25, %v1955_v25 }
 0x2c4   :  { %v2018_v43 = vmul.f32 %v1954_v42, %v1954_v42  ;;  %v2080_v16 = vadd.f32 %v2079_v20, %v2017_v39  ;;  %v2584_v45 = vpop.f32.mrb[38].mxu1  ;;  %v2693_v39 = vld [vmem:[#allocation2 + $0x180] sm:$0xff] }
 0x2c5   :  { %1893 = vst [vmem:[#allocation7 + $0x138] sm:$0xff] %v2584_v45  ;;  %v1725_v12 = vpop.f32.mrb[39].mxu1  ;;  %v1957_v51 = vsub.f32 %v2584_v45, %v2682_v29  ;;  %v2694_v45 = vld [vmem:[#allocation2 + $0x198] sm:$0xff] }
 0x2c6   :  { %v2081_v17 = vadd.f32 %v2080_v16, %v2018_v43  ;;  %1892 = vst [vmem:[#allocation7 + $0x130] sm:$0xff] %v1725_v12  ;;  %v1956_v27 = vsub.f32 %v1725_v12, %v2683_v53 }
 0x2c7   :  { %v2021_v18 = vmul.f32 %v1957_v51, %v1957_v51 }
 0x2c8   :  { %v2020_v52 = vmul.f32 %v1956_v27, %v1956_v27  ;;  %v2082_v54 = vadd.f32 %v2081_v17, %v2019_v28  ;;  %v2587_v55 = vpop.f32.mrb[40].mxu1  ;;  %v2695_v28 = vld [vmem:[#allocation2 + $0x190] sm:$0xff] }
 0x2c9   :  { %1895 = vst [vmem:[#allocation7 + $0x148] sm:$0xff] %v2587_v55  ;;  %v1735_v36 = vpop.f32.mrb[41].mxu1  ;;  %v1959_v26 = vsub.f32 %v2587_v55, %v2684_v44  ;;  %v2696_v55 = vld [vmem:[#allocation2 + $0x1a8] sm:$0xff] }
 0x2ca   :  { %v2083_v56 = vadd.f32 %v2082_v54, %v2020_v52  ;;  %1894 = vst [vmem:[#allocation7 + $0x140] sm:$0xff] %v1735_v36  ;;  %v1958_v31 = vsub.f32 %v1735_v36, %v2685_v1 }
 0x2cb   :  { %v2023_v60 = vmul.f32 %v1959_v26, %v1959_v26 }
 0x2cc   :  { %v2022_v48 = vmul.f32 %v1958_v31, %v1958_v31  ;;  %v2084_v58 = vadd.f32 %v2083_v56, %v2021_v18  ;;  %v2590_v3 = vpop.f32.mrb[42].mxu1  ;;  %v2697_v18 = vld [vmem:[#allocation2 + $0x1a0] sm:$0xff] }
 0x2cd   :  { %1897 = vst [vmem:[#allocation7 + $0x158] sm:$0xff] %v2590_v3  ;;  %v1745_v59 = vpop.f32.mrb[43].mxu1  ;;  %v1961_v57 = vsub.f32 %v2590_v3, %v2686_v62  ;;  %v2698_v3 = vld [vmem:[#allocation2 + $0x1b8] sm:$0xff] }
 0x2ce   :  { %v2085_v61 = vadd.f32 %v2084_v58, %v2022_v48  ;;  %1896 = vst [vmem:[#allocation7 + $0x150] sm:$0xff] %v1745_v59  ;;  %v1960_v2 = vsub.f32 %v1745_v59, %v2687_v63 }
 0x2cf   :  { %v2025_v21 = vmul.f32 %v1961_v57, %v1961_v57 }
 0x2d0   :  { %v2024_v19 = vmul.f32 %v1960_v2, %v1960_v2  ;;  %v2086_v5 = vadd.f32 %v2085_v61, %v2023_v60  ;;  %v2593_v23 = vpop.f32.mrb[44].mxu1  ;;  %v2699_v60 = vld [vmem:[#allocation2 + $0x1b0] sm:$0xff] }
 0x2d1   :  { %1899 = vst [vmem:[#allocation7 + $0x168] sm:$0xff] %v2593_v23  ;;  %v1755_v47 = vpop.f32.mrb[45].mxu1  ;;  %v1963_v7 = vsub.f32 %v2593_v23, %v2688_v50  ;;  %v2700_v23 = vld [vmem:[#allocation2 + $0x1c8] sm:$0xff] }
 0x2d2   :  { %v2087_v6 = vadd.f32 %v2086_v5, %v2024_v19  ;;  %1898 = vst [vmem:[#allocation7 + $0x160] sm:$0xff] %v1755_v47  ;;  %v1962_v37 = vsub.f32 %v1755_v47, %v2689_v8 }
 0x2d3   :  { %v2027_v9 = vmul.f32 %v1963_v7, %v1963_v7 }
 0x2d4   :  { %v2026_v10 = vmul.f32 %v1962_v37, %v1962_v37  ;;  %v2088_v11 = vadd.f32 %v2087_v6, %v2025_v21  ;;  %v2596_v22 = vpop.f32.mrb[46].mxu1  ;;  %v2701_v21 = vld [vmem:[#allocation2 + $0x1c0] sm:$0xff] }
 0x2d5   :  { %1901 = vst [vmem:[#allocation7 + $0x178] sm:$0xff] %v2596_v22  ;;  %v1765_v46 = vpop.f32.mrb[47].mxu1  ;;  %v1965_v49 = vsub.f32 %v2596_v22, %v2690_v13  ;;  %v2702_v22 = vld [vmem:[#allocation2 + $0x1d8] sm:$0xff] }
 0x2d6   :  { %v2089_v0 = vadd.f32 %v2088_v11, %v2026_v10  ;;  %1900 = vst [vmem:[#allocation7 + $0x170] sm:$0xff] %v1765_v46  ;;  %v1964_v4 = vsub.f32 %v1765_v46, %v2691_v30 }
 0x2d7   :  { %v2029_v38 = vmul.f32 %v1965_v49, %v1965_v49 }
 0x2d8   :  { %v2028_v32 = vmul.f32 %v1964_v4, %v1964_v4  ;;  %v2090_v14 = vadd.f32 %v2089_v0, %v2027_v9  ;;  %v2599_v35 = vpop.f32.mrb[48].mxu1  ;;  %v2703_v9 = vld [vmem:[#allocation2 + $0x1d0] sm:$0xff] }
 0x2d9   :  { %1903 = vst [vmem:[#allocation7 + $0x188] sm:$0xff] %v2599_v35  ;;  %v1775_v15 = vpop.f32.mrb[49].mxu1  ;;  %v1967_v33 = vsub.f32 %v2599_v35, %v2692_v34  ;;  %v2704_v35 = vld [vmem:[#allocation2 + $0x1e8] sm:$0xff] }
 0x2da   :  { %v2091_v24 = vadd.f32 %v2090_v14, %v2028_v32  ;;  %1902 = vst [vmem:[#allocation7 + $0x180] sm:$0xff] %v1775_v15  ;;  %v1966_v20 = vsub.f32 %v1775_v15, %v2693_v39 }
 0x2db   :  { %v2031_v43 = vmul.f32 %v1967_v33, %v1967_v33 }
 0x2dc   :  { %v2030_v40 = vmul.f32 %v1966_v20, %v1966_v20  ;;  %v2092_v25 = vadd.f32 %v2091_v24, %v2029_v38  ;;  %v2602_v41 = vpop.f32.mrb[50].mxu1  ;;  %v2705_v38 = vld [vmem:[#allocation2 + $0x1e0] sm:$0xff] }
 0x2dd   :  { %1905 = vst [vmem:[#allocation7 + $0x198] sm:$0xff] %v2602_v41  ;;  %v1785_v42 = vpop.f32.mrb[51].mxu1  ;;  %v1969_v12 = vsub.f32 %v2602_v41, %v2694_v45  ;;  %v2706_v41 = vld [vmem:[#allocation2 + $0x1f8] sm:$0xff] }
 0x2de   :  { %v2093_v16 = vadd.f32 %v2092_v25, %v2030_v40  ;;  %1904 = vst [vmem:[#allocation7 + $0x190] sm:$0xff] %v1785_v42  ;;  %v1968_v17 = vsub.f32 %v1785_v42, %v2695_v28 }
 0x2df   :  { %v2033_v52 = vmul.f32 %v1969_v12, %v1969_v12 }
 0x2e0   :  { %v2032_v29 = vmul.f32 %v1968_v17, %v1968_v17  ;;  %v2094_v51 = vadd.f32 %v2093_v16, %v2031_v43  ;;  %v2605_v53 = vpop.f32.mrb[52].mxu1  ;;  %v2707_v43 = vld [vmem:[#allocation2 + $0x1f0] sm:$0xff] }
 0x2e1   :  { %1907 = vst [vmem:[#allocation7 + $0x1a8] sm:$0xff] %v2605_v53  ;;  %v1795_v27 = vpop.f32.mrb[53].mxu1  ;;  %v1971_v36 = vsub.f32 %v2605_v53, %v2696_v55 }
 0x2e2   :  { %v2095_v54 = vadd.f32 %v2094_v51, %v2032_v29  ;;  %1906 = vst [vmem:[#allocation7 + $0x1a0] sm:$0xff] %v1795_v27  ;;  %v1970_v56 = vsub.f32 %v1795_v27, %v2697_v18 }
 0x2e3   :  { %v2035_v48 = vmul.f32 %v1971_v36, %v1971_v36 }
 0x2e4   :  { %v2034_v44 = vmul.f32 %v1970_v56, %v1970_v56  ;;  %v2096_v26 = vadd.f32 %v2095_v54, %v2033_v52  ;;  %v2608_v1 = vpop.f32.mrb[54].mxu1 }
 0x2e5   :  { %1909 = vst [vmem:[#allocation7 + $0x1b8] sm:$0xff] %v2608_v1  ;;  %v1805_v31 = vpop.f32.mrb[55].mxu1  ;;  %v1973_v59 = vsub.f32 %v2608_v1, %v2698_v3 }
 0x2e6   :  { %v2097_v58 = vadd.f32 %v2096_v26, %v2034_v44  ;;  %1908 = vst [vmem:[#allocation7 + $0x1b0] sm:$0xff] %v1805_v31  ;;  %v1972_v61 = vsub.f32 %v1805_v31, %v2699_v60 }
 0x2e7   :  { %v2037_v19 = vmul.f32 %v1973_v59, %v1973_v59 }
 0x2e8   :  { %v2036_v62 = vmul.f32 %v1972_v61, %v1972_v61  ;;  %v2098_v57 = vadd.f32 %v2097_v58, %v2035_v48  ;;  %v2611_v63 = vpop.f32.mrb[56].mxu1 }
 0x2e9   :  { %1911 = vst [vmem:[#allocation7 + $0x1c8] sm:$0xff] %v2611_v63  ;;  %v1815_v2 = vpop.f32.mrb[57].mxu1  ;;  %v1975_v47 = vsub.f32 %v2611_v63, %v2700_v23 }
 0x2ea   :  { %v2099_v5 = vadd.f32 %v2098_v57, %v2036_v62  ;;  %1910 = vst [vmem:[#allocation7 + $0x1c0] sm:$0xff] %v1815_v2  ;;  %v1974_v6 = vsub.f32 %v1815_v2, %v2701_v21 }
 0x2eb   :  { %v2039_v10 = vmul.f32 %v1975_v47, %v1975_v47 }
 0x2ec   :  { %v2038_v50 = vmul.f32 %v1974_v6, %v1974_v6  ;;  %v2100_v7 = vadd.f32 %v2099_v5, %v2037_v19  ;;  %v2614_v8 = vpop.f32.mrb[58].mxu1 }
 0x2ed   :  { %1913 = vst [vmem:[#allocation7 + $0x1d8] sm:$0xff] %v2614_v8  ;;  %v1825_v37 = vpop.f32.mrb[59].mxu1  ;;  %v1977_v46 = vsub.f32 %v2614_v8, %v2702_v22 }
 0x2ee   :  { %v2101_v11 = vadd.f32 %v2100_v7, %v2038_v50  ;;  %1912 = vst [vmem:[#allocation7 + $0x1d0] sm:$0xff] %v1825_v37  ;;  %v1976_v0 = vsub.f32 %v1825_v37, %v2703_v9 }
 0x2ef   :  { %v2041_v32 = vmul.f32 %v1977_v46, %v1977_v46 }
 0x2f0   :  { %v2040_v13 = vmul.f32 %v1976_v0, %v1976_v0  ;;  %v2102_v49 = vadd.f32 %v2101_v11, %v2039_v10  ;;  %v2617_v30 = vpop.f32.mrb[60].mxu1 }
 0x2f1   :  { %1915 = vst [vmem:[#allocation7 + $0x1e8] sm:$0xff] %v2617_v30  ;;  %v1835_v4 = vpop.f32.mrb[61].mxu1  ;;  %v1979_v15 = vsub.f32 %v2617_v30, %v2704_v35 }
 0x2f2   :  { %v2103_v14 = vadd.f32 %v2102_v49, %v2040_v13  ;;  %1914 = vst [vmem:[#allocation7 + $0x1e0] sm:$0xff] %v1835_v4  ;;  %v1978_v24 = vsub.f32 %v1835_v4, %v2705_v38 }
 0x2f3   :  { %v2043_v40 = vmul.f32 %v1979_v15, %v1979_v15 }
 0x2f4   :  { %v2042_v34 = vmul.f32 %v1978_v24, %v1978_v24  ;;  %v2104_v33 = vadd.f32 %v2103_v14, %v2041_v32  ;;  %v2620_v39 = vpop.f32.mrb[62].mxu1 }
 0x2f5   :  { %1917 = vst [vmem:[#allocation7 + $0x1f8] sm:$0xff] %v2620_v39  ;;  %v1845_v20 = vpop.f32.mrb[63].mxu1  ;;  %v1981_v42 = vsub.f32 %v2620_v39, %v2706_v41 }
 0x2f6   :  { %v2105_v25 = vadd.f32 %v2104_v33, %v2042_v34  ;;  %1916 = vst [vmem:[#allocation7 + $0x1f0] sm:$0xff] %v1845_v20  ;;  %v1980_v16 = vsub.f32 %v1845_v20, %v2707_v43 }
 0x2f7   :  { %2763 = shalt.err (!%p2760_p6)
}
 0x2f8   :  { %s2764_s19 = scalar_lea.hbm %s3343_s3, 8192 }
 0x2f9   :  { %p2765_p7 = scmp.ne.s32.totalorder %s3343_s3, %s2764_s19  ;;  %p2768_p8 = scmp.lt.u32.totalorder %s2764_s19, %s3343_s3 }
 0x2fb   :  { %p2770_p9 = pnand %p2768_p8, %p2765_p7 }
 0x2fd   :  { %2773 = shalt.err (!%p2770_p9)
}
 0x2fe   :  { %2127 = dma.vmem_to_hbm [thread:$0]  %s2122_s15, 8192, %s3343_s3, [#allocation4], %s2805_s25, %s2805_s25, %s2806_s26   ;;  %v2044_v45 = vmul.f32 %v1980_v16, %v1980_v16  ;;  %v2106_v12 = vadd.f32 %v2105_v25, %v2043_v40  ;;  %v2045_v28 = vmul.f32 %v1981_v42, %v1981_v42 }
 0x2ff   :  { %s2810_s28 = smov [#allocation8]  }
 0x300   :  { %v2107_v17 = vadd.f32 %v2106_v12, %v2044_v45  ;;  %s2134_s29 = sshll.u32 %s2810_s28, 4  ;;  %s2135_s29 = int_to_ptr.vmem [resolvable:$true] %s2134_s29 }
 0x301   :  { %s2774_s30 = scalar_lea.vmem %s2135_s29, 16  ;;  %s2778_s5 = scalar_lea.vmem %s2135_s29, 32 }
 0x302   :  { %v2108_v29 = vadd.f32 %v2107_v17, %v2045_v28  ;;  %p2775_p10 = scmp.ne.s32.totalorder %s2135_s29, %s2774_s30  ;;  %p2779_p11 = scmp.lt.s32.totalorder %s2135_s29, %s2135_s29 }
 0x303   :  { %p2780_p12 = scmp.lt.s32.totalorder %s2778_s5, %s2774_s30 }
 0x304   :  { %v2109_v51 = vrot.slane %v2108_v29, 4 }
 0x305   :  { %p2781_p13 = por %p2780_p12, %p2779_p11 }
 0x306   :  { %v2110_v53 = vadd.f32 %v2109_v51, %v2108_v29 }
 0x307   :  { %p2782_p0 = pnand %p2781_p13, %p2775_p10 }
 0x308   :  { %v2111_v27 = vrot.slane %v2110_v53, 2 }
 0x30a   :  { %v2112_v52 = vadd.f32 %v2111_v27, %v2110_v53 }
 0x30c   :  { %v2113_v54 = vrot.slane %v2112_v52, 1 }
 0x30e   :  { %v2114_v55 = vadd.f32 %v2113_v54, %v2112_v52 }
 0x310   :  { %2115 = vst [vmem:[#allocation8] sm:$0x1] %v2114_v55 }
 0x311   :  { %2785 = shalt.err (!%p2782_p0)
}
 0x312   :  { %s2786_s26 = scalar_lea.hbm %s3344_s4, 16 }
 0x313   :  { %p2787_p1 = scmp.ne.s32.totalorder %s3344_s4, %s2786_s26  ;;  %p2790_p2 = scmp.lt.u32.totalorder %s2786_s26, %s3344_s4 }
 0x315   :  { %p2792_p3 = pnand %p2790_p2, %p2787_p1 }
 0x317   :  { %2795 = shalt.err (!%p2792_p3)
}
 0x318   :  { %2137 = dma.vmem_to_hbm [thread:$0]  %s2135_s29, 16, %s3344_s4, [#allocation9]  }
 0x319   :  { %2800 = dma.done.wait [#allocation4], 8192  }
 0x31a   :  { %2801 = vsyncadd [#allocation4], 4294959104 }
 0x31b   :  { %2802 = dma.done.wait [#allocation9], 16  }
 0x31c   :  { %2803 = vsyncadd [#allocation9], 4294967280 }
 0x31d   :  { %2144 = vsyncpa [#allocation3], 1 }
 0x31e   :  { %2145 = vsyncpa [#allocation6], 1 }
 0x31f   :  { %2146 = vsyncpa [#allocation4], 1 }
 0x320   :  { %2147 = vsyncpa [#allocation9], 1 }

</bundles_post_ra>
